<compile_context>
chip_gen: v7x
topology: tpu7x:2x2x1
jax: 0.10.0
libtpu: 0.0.40
codegen_flags: <defaults>
</compile_context>

<pallas_src>
import functools

import jax
import jax.numpy as jnp
from jax import lax
from jax.experimental import pallas as pl
from jax.experimental.pallas import tpu as pltpu

_LANE = 128
_SUBLANE = 8


def _round_up(n, q):
    return ((n + q - 1) // q) * q


def _largest_divisor_tile(n, max_tile, quantum):
    """Largest multiple of `quantum` dividing n that is <= max_tile.

    The wrapper pads n to a multiple of `quantum`, so this always succeeds
    (worst case it returns `quantum`)."""
    if n <= max_tile:
        return n
    t = (max_tile // quantum) * quantum
    while t >= quantum:
        if n % t == 0:
            return t
        t -= quantum
    return n


def _vmem_capacity_bytes():
    try:
        info = pltpu.get_tpu_info()
        cap = getattr(info, "vmem_capacity_bytes", None)
        if cap:
            return int(cap)
    except Exception:
        pass
    return 64 * 1024 * 1024  # v7x-safe fallback


def _pairwise_pnorm_kernel(x1t_ref, x2_ref, o_ref, *, p, eps, c2):
    # x1t_ref: (TB, D, TN1)  -- x1 transposed; TN1 (output lane axis) is minor.
    # x2_ref : (TB, TN2, D)
    # o_ref  : (TB, TN2, TN1)
    tb, tn2, tn1 = o_ref.shape
    d_dim = x1t_ref.shape[1]

    for b in range(tb):  # static unroll over the (small) folded batch block
        if p == 2.0:
            # MXU path: ||x1 - (x2 - eps)||^2 = ||x1||^2 - 2 x1.(x2-eps) + ||x2-eps||^2
            x1t = x1t_ref[b].astype(jnp.float32)               # (D, TN1)
            x2e = x2_ref[b].astype(jnp.float32) - eps          # (TN2, D)
            g = jnp.dot(x2e, x1t, preferred_element_type=jnp.float32)  # (TN2, TN1)
            q1 = jnp.sum(x1t * x1t, axis=0, keepdims=True)     # (1, TN1)
            q2 = jnp.sum(x2e * x2e, axis=1, keepdims=True)     # (TN2, 1)
            d2 = jnp.maximum(q1 + q2 - 2.0 * g, 0.0)           # clamp cancellation
            o_ref[b] = jnp.sqrt(d2).astype(o_ref.dtype)
            continue

        # p != 2: VPU path. Accumulate over D directly in the (c2, TN1) output
        # layout -- TN1 stays on lanes end-to-end, no 3-D intermediate, no
        # cross-lane reduce, no relayout before the (unmasked, lane-dense) store.
        def chunk_body(start, b=b):
            acc = jnp.zeros((c2, tn1), jnp.float32)

            def d_step(d, acc):
                a = x1t_ref[b, pl.ds(d, 1), :].astype(jnp.float32)          # (1, TN1)
                col = x2_ref[b, pl.ds(start, c2), pl.ds(d, 1)]
                col = col.astype(jnp.float32) - eps                          # (c2, 1)
                diff = a - col                                               # x1 - x2 + eps
                if p == 1.0:
                    return acc + jnp.abs(diff)
                return acc + jnp.power(jnp.abs(diff), p)

            if d_dim <= 64:
                for d in range(d_dim):          # static: LLO sees the chain
                    acc = d_step(d, acc)
            else:
                acc = lax.fori_loop(0, d_dim, d_step, acc, unroll=8)

            res = acc if p == 1.0 else jnp.power(acc, 1.0 / p)
            o_ref[b, pl.ds(start, c2), :] = res.astype(o_ref.dtype)

        n_chunks = tn2 // c2
        if n_chunks <= 8:
            for ci in range(n_chunks):
                chunk_body(ci * c2)
        else:
            def outer(ci, carry):
                chunk_body(pl.multiple_of(ci * c2, c2))
                return carry

            lax.fori_loop(0, n_chunks, outer, 0)


def pairwise_pnorm(x1: jax.Array, x2: jax.Array, p: float = 1.0,
                   eps: float = 1e-6) -> jax.Array:
    """Pallas implementation of PairwisePNorm.forward (default p=1.0)."""
    assert x1.ndim == x2.ndim
    squeeze_batch = False
    if x1.ndim == 2:
        x1, x2 = x1[None], x2[None]
        squeeze_batch = True
    elif x1.ndim != 3:
        raise ValueError("Unexpected dimension")

    B, N1, D = x1.shape
    B2, N2, D2 = x2.shape
    assert B == B2 and D == D2

    out_dtype = x1.dtype
    isz = jnp.dtype(x1.dtype).itemsize
    osz = jnp.dtype(out_dtype).itemsize

    # Pad the lane dim (N1) to a multiple of 128 and the sublane dim (N2) to a
    # multiple of 8: every block is then (8,128)-aligned (unmasked stores) and
    # tile selection can never be forced past the VMEM budget. Padded rows /
    # columns are sliced off at the end.
    N1p = max(_round_up(N1, _LANE), _LANE)
    N2p = max(_round_up(N2, _SUBLANE), _SUBLANE)
    if N1p != N1:
        x1 = jnp.pad(x1, ((0, 0), (0, N1p - N1), (0, 0)))
    if N2p != N2:
        x2 = jnp.pad(x2, ((0, 0), (0, N2p - N2), (0, 0)))

    # Transpose x1 once (layout plumbing) so the kernel's x1 tile is (D, TN1)
    # with the output lane axis minor -> lane-dense accumulation over D.
    x1t = jnp.swapaxes(x1, 1, 2)  # (B, D, N1p)

    # ---- generation-aware VMEM budget & tile selection -----------------------
    vmem_cap = _vmem_capacity_bytes()
    budget = min(int(vmem_cap * 0.45), 48 * 1024 * 1024)

    def footprint(t1, t2, tb=1):
        # double-buffered x1t / x2 / out blocks
        return 2 * tb * (D * t1 * isz + t2 * D * isz + t2 * t1 * osz)

    max_tn1, max_tn2 = 512, 512
    while footprint(max_tn1, max_tn2) > budget and (max_tn1 > _LANE or max_tn2 > _SUBLANE):
        if max_tn2 > _SUBLANE and (max_tn2 >= max_tn1 or max_tn1 <= _LANE):
            max_tn2 = max(_SUBLANE, max_tn2 // 2)
        else:
            max_tn1 = max(_LANE, max_tn1 // 2)

    TN1 = _largest_divisor_tile(N1p, max_tn1, _LANE)   # output lane dim
    TN2 = _largest_divisor_tile(N2p, max_tn2, _SUBLANE)  # output sublane dim

    # Fold several tiny batches into one grid step (amortize ~0.35us/step).
    TB = 1
    if B > 1 and TN1 == N1p and TN2 == N2p and D <= 128:
        per_b = (D * TN1 + TN2 * D) * isz + TN2 * TN1 * osz
        if per_b <= 128 * 1024:
            TB = _largest_divisor_tile(B, 8, 1)

    # Accumulator sublane height: always >=8 dense sublanes, capped ~32 KiB.
    c2 = _SUBLANE
    for cand in (32, 16):
        if TN2 % cand == 0 and cand * TN1 * 4 <= 32 * 1024:
            c2 = cand
            break

    gb, g2, g1 = B // TB, N2p // TN2, N1p // TN1

    # Sweep the operand that is cheaper to re-stream on the inner grid axis so
    # the other operand's tile stays resident (block index unchanged).
    extra_inner_n1 = N1p * D * isz * (g2 - 1)   # x1 re-read if N1 is innermost
    extra_inner_n2 = N2p * D * isz * (g1 - 1)   # x2 re-read if N2 is innermost
    if extra_inner_n1 <= extra_inner_n2:
        grid = (gb, g2, g1)
        x1_map = lambda b, i2, i1: (b, 0, i1)
        x2_map = lambda b, i2, i1: (b, i2, 0)
        o_map = lambda b, i2, i1: (b, i2, i1)
    else:
        grid = (gb, g1, g2)
        x1_map = lambda b, i1, i2: (b, 0, i1)
        x2_map = lambda b, i1, i2: (b, i2, 0)
        o_map = lambda b, i1, i2: (b, i2, i1)

    out = pl.pallas_call(
        functools.partial(_pairwise_pnorm_kernel, p=float(p), eps=float(eps),
                          c2=c2),
        out_shape=jax.ShapeDtypeStruct((B, N2p, N1p), out_dtype),
        grid_spec=pltpu.PrefetchScalarGridSpec(
            num_scalar_prefetch=0,
            grid=grid,
            in_specs=[
                pl.BlockSpec((TB, D, TN1), x1_map),
                pl.BlockSpec((TB, TN2, D), x2_map),
            ],
            out_specs=pl.BlockSpec((TB, TN2, TN1), o_map),
        ),
        compiler_params=pltpu.CompilerParams(
            # Every grid step writes a distinct output tile -> all parallel
            # (lets both v7x TensorCores get work even when B*(N2/TN2) < 2).
            dimension_semantics=("parallel", "parallel", "parallel"),
            vmem_limit_bytes=int(min(vmem_cap * 3 // 4, 100 * 1024 * 1024)),
        ),
    )(x1t, x2)

    out = out[:, :N2, :N1]
    if squeeze_batch:
        out = out[0]
    return out


def _pairwise_pnorm_ref(x1, x2, p=1.0, eps=1e-6):
    # Pure-JAX reference mirroring torch.nn.PairwiseDistance on the broadcast
    # pairwise expansion used by the module.
    squeeze = False
    if x1.ndim == 2:
        x1, x2 = x1[None], x2[None]
        squeeze = True
    diff = x1[:, None, :, :] - x2[:, :, None, :] + eps   # (B, N2, N1, D)
    if p == 1.0:
        out = jnp.sum(jnp.abs(diff), axis=-1)
    elif p == 2.0:
        out = jnp.sqrt(jnp.sum(diff * diff, axis=-1))
    else:
        out = jnp.power(jnp.sum(jnp.power(jnp.abs(diff), p), axis=-1), 1.0 / p)
    return out[0] if squeeze else out


if __name__ == "__main__":
    key = jax.random.PRNGKey(0)
    ks = jax.random.split(key, 10)

    # 3D small case (batch-folding path): B=2, N1=8, N2=16, D=32.
    x1_3d = jax.random.normal(ks[0], (2, 8, 32), dtype=jnp.float32)
    x2_3d = jax.random.normal(ks[1], (2, 16, 32), dtype=jnp.float32)
    out_3d = jax.block_until_ready(pairwise_pnorm(x1_3d, x2_3d))
    ref_3d = _pairwise_pnorm_ref(x1_3d, x2_3d)
    assert out_3d.shape == (2, 16, 8)
    assert jnp.allclose(out_3d, ref_3d, atol=1e-4, rtol=1e-4)

    # 2D case: N1=8, N2=16, D=32.
    x1_2d = jax.random.normal(ks[2], (8, 32), dtype=jnp.float32)
    x2_2d = jax.random.normal(ks[3], (16, 32), dtype=jnp.float32)
    out_2d = jax.block_until_ready(pairwise_pnorm(x1_2d, x2_2d))
    ref_2d = _pairwise_pnorm_ref(x1_2d, x2_2d)
    assert out_2d.shape == (16, 8)
    assert jnp.allclose(out_2d, ref_2d, atol=1e-4, rtol=1e-4)

    # Tiled path: N1=1024 (two 512-lane output tiles), N2=128 (8 chunks, c2=16).
    x1_t = jax.random.normal(ks[4], (1, 1024, 32), dtype=jnp.float32)
    x2_t = jax.random.normal(ks[5], (1, 128, 32), dtype=jnp.float32)
    out_t = jax.block_until_ready(pairwise_pnorm(x1_t, x2_t))
    ref_t = _pairwise_pnorm_ref(x1_t, x2_t)
    assert out_t.shape == (1, 128, 1024)
    assert jnp.allclose(out_t, ref_t, atol=1e-3, rtol=1e-3)

    # Ragged shapes exercising the padding path: N1=200, N2=30, D=48.
    x1_r = jax.random.normal(ks[6], (1, 200, 48), dtype=jnp.float32)
    x2_r = jax.random.normal(ks[7], (1, 30, 48), dtype=jnp.float32)
    out_r = jax.block_until_ready(pairwise_pnorm(x1_r, x2_r))
    ref_r = _pairwise_pnorm_ref(x1_r, x2_r)
    assert out_r.shape == (1, 30, 200)
    assert jnp.allclose(out_r, ref_r, atol=1e-3, rtol=1e-3)

    # p=2 MXU path.
    x1_p2 = jax.random.normal(ks[8], (1, 256, 64), dtype=jnp.float32)
    x2_p2 = jax.random.normal(ks[9], (1, 64, 64), dtype=jnp.float32)
    out_p2 = jax.block_until_ready(pairwise_pnorm(x1_p2, x2_p2, p=2.0))
    ref_p2 = _pairwise_pnorm_ref(x1_p2, x2_p2, p=2.0)
    assert out_p2.shape == (1, 64, 256)
    assert jnp.allclose(out_p2, ref_p2, atol=1e-3, rtol=1e-3)

    print("KERNEL_OK")
</pallas_src>

<mosaic_0001>
module attributes {stable_mosaic.version = 11 : i64} {
  func.func @_pairwise_pnorm_kernel(%arg0: i32, %arg1: i32, %arg2: i32, %arg3: memref<2x32x128xf32, #tpu.memory_space<vmem>>, %arg4: memref<2x16x32xf32, #tpu.memory_space<vmem>>, %arg5: memref<2x16x128xf32, #tpu.memory_space<vmem>>) attributes {dimension_semantics = [#tpu.dimension_semantics<parallel>, #tpu.dimension_semantics<parallel>, #tpu.dimension_semantics<parallel>], iteration_bounds = array<i64: 1, 1, 1>, scalar_prefetch = 0 : i64, scratch_operands = 0 : i64, tpu.core_type = #tpu.core_type<tc>, window_params = [{transform_indices = @transform_0, window_bounds = array<i64: 2, 32, 128>}, {transform_indices = @transform_1, window_bounds = array<i64: 2, 16, 32>}, {transform_indices = @transform_2, window_bounds = array<i64: 2, 16, 128>}]} {
    %cst = arith.constant 0.000000e+00 : f32
    %0 = vector.broadcast %cst : f32 to vector<16x128xf32>
    %c0 = arith.constant 0 : index
    %c0_0 = arith.constant 0 : index
    %c0_1 = arith.constant 0 : index
    %1 = vector.load %arg3[%c0, %c0_0, %c0_1] : memref<2x32x128xf32, #tpu.memory_space<vmem>>, vector<1x1x128xf32>
    %2 = vector.shape_cast %1 : vector<1x1x128xf32> to vector<1x128xf32>
    %c0_2 = arith.constant 0 : index
    %c0_3 = arith.constant 0 : index
    %c0_4 = arith.constant 0 : index
    %3 = vector.load %arg4[%c0_2, %c0_3, %c0_4] : memref<2x16x32xf32, #tpu.memory_space<vmem>>, vector<1x16x1xf32>
    %4 = vector.shape_cast %3 : vector<1x16x1xf32> to vector<16x1xf32>
    %cst_5 = arith.constant 9.99999997E-7 : f32
    %5 = vector.broadcast %cst_5 : f32 to vector<16x1xf32>
    %6 = arith.subf %4, %5 : vector<16x1xf32>
    %7 = vector.broadcast %2 : vector<1x128xf32> to vector<16x128xf32>
    %8 = vector.broadcast %6 : vector<16x1xf32> to vector<16x128xf32>
    %9 = arith.subf %7, %8 : vector<16x128xf32>
    %10 = math.absf %9 : vector<16x128xf32>
    %11 = arith.addf %0, %10 : vector<16x128xf32>
    %c0_6 = arith.constant 0 : index
    %c1 = arith.constant 1 : index
    %c0_7 = arith.constant 0 : index
    %12 = vector.load %arg3[%c0_6, %c1, %c0_7] : memref<2x32x128xf32, #tpu.memory_space<vmem>>, vector<1x1x128xf32>
    %13 = vector.shape_cast %12 : vector<1x1x128xf32> to vector<1x128xf32>
    %c0_8 = arith.constant 0 : index
    %c0_9 = arith.constant 0 : index
    %c1_10 = arith.constant 1 : index
    %14 = vector.load %arg4[%c0_8, %c0_9, %c1_10] : memref<2x16x32xf32, #tpu.memory_space<vmem>>, vector<1x16x1xf32>
    %15 = vector.shape_cast %14 : vector<1x16x1xf32> to vector<16x1xf32>
    %cst_11 = arith.constant 9.99999997E-7 : f32
    %16 = vector.broadcast %cst_11 : f32 to vector<16x1xf32>
    %17 = arith.subf %15, %16 : vector<16x1xf32>
    %18 = vector.broadcast %13 : vector<1x128xf32> to vector<16x128xf32>
    %19 = vector.broadcast %17 : vector<16x1xf32> to vector<16x128xf32>
    %20 = arith.subf %18, %19 : vector<16x128xf32>
    %21 = math.absf %20 : vector<16x128xf32>
    %22 = arith.addf %11, %21 : vector<16x128xf32>
    %c0_12 = arith.constant 0 : index
    %c2 = arith.constant 2 : index
    %c0_13 = arith.constant 0 : index
    %23 = vector.load %arg3[%c0_12, %c2, %c0_13] : memref<2x32x128xf32, #tpu.memory_space<vmem>>, vector<1x1x128xf32>
    %24 = vector.shape_cast %23 : vector<1x1x128xf32> to vector<1x128xf32>
    %c0_14 = arith.constant 0 : index
    %c0_15 = arith.constant 0 : index
    %c2_16 = arith.constant 2 : index
    %25 = vector.load %arg4[%c0_14, %c0_15, %c2_16] : memref<2x16x32xf32, #tpu.memory_space<vmem>>, vector<1x16x1xf32>
    %26 = vector.shape_cast %25 : vector<1x16x1xf32> to vector<16x1xf32>
    %cst_17 = arith.constant 9.99999997E-7 : f32
    %27 = vector.broadcast %cst_17 : f32 to vector<16x1xf32>
    %28 = arith.subf %26, %27 : vector<16x1xf32>
    %29 = vector.broadcast %24 : vector<1x128xf32> to vector<16x128xf32>
    %30 = vector.broadcast %28 : vector<16x1xf32> to vector<16x128xf32>
    %31 = arith.subf %29, %30 : vector<16x128xf32>
    %32 = math.absf %31 : vector<16x128xf32>
    %33 = arith.addf %22, %32 : vector<16x128xf32>
    %c0_18 = arith.constant 0 : index
    %c3 = arith.constant 3 : index
    %c0_19 = arith.constant 0 : index
    %34 = vector.load %arg3[%c0_18, %c3, %c0_19] : memref<2x32x128xf32, #tpu.memory_space<vmem>>, vector<1x1x128xf32>
    %35 = vector.shape_cast %34 : vector<1x1x128xf32> to vector<1x128xf32>
    %c0_20 = arith.constant 0 : index
    %c0_21 = arith.constant 0 : index
    %c3_22 = arith.constant 3 : index
    %36 = vector.load %arg4[%c0_20, %c0_21, %c3_22] : memref<2x16x32xf32, #tpu.memory_space<vmem>>, vector<1x16x1xf32>
    %37 = vector.shape_cast %36 : vector<1x16x1xf32> to vector<16x1xf32>
    %cst_23 = arith.constant 9.99999997E-7 : f32
    %38 = vector.broadcast %cst_23 : f32 to vector<16x1xf32>
    %39 = arith.subf %37, %38 : vector<16x1xf32>
    %40 = vector.broadcast %35 : vector<1x128xf32> to vector<16x128xf32>
    %41 = vector.broadcast %39 : vector<16x1xf32> to vector<16x128xf32>
    %42 = arith.subf %40, %41 : vector<16x128xf32>
    %43 = math.absf %42 : vector<16x128xf32>
    %44 = arith.addf %33, %43 : vector<16x128xf32>
    %c0_24 = arith.constant 0 : index
    %c4 = arith.constant 4 : index
    %c0_25 = arith.constant 0 : index
    %45 = vector.load %arg3[%c0_24, %c4, %c0_25] : memref<2x32x128xf32, #tpu.memory_space<vmem>>, vector<1x1x128xf32>
    %46 = vector.shape_cast %45 : vector<1x1x128xf32> to vector<1x128xf32>
    %c0_26 = arith.constant 0 : index
    %c0_27 = arith.constant 0 : index
    %c4_28 = arith.constant 4 : index
    %47 = vector.load %arg4[%c0_26, %c0_27, %c4_28] : memref<2x16x32xf32, #tpu.memory_space<vmem>>, vector<1x16x1xf32>
    %48 = vector.shape_cast %47 : vector<1x16x1xf32> to vector<16x1xf32>
    %cst_29 = arith.constant 9.99999997E-7 : f32
    %49 = vector.broadcast %cst_29 : f32 to vector<16x1xf32>
    %50 = arith.subf %48, %49 : vector<16x1xf32>
    %51 = vector.broadcast %46 : vector<1x128xf32> to vector<16x128xf32>
    %52 = vector.broadcast %50 : vector<16x1xf32> to vector<16x128xf32>
    %53 = arith.subf %51, %52 : vector<16x128xf32>
    %54 = math.absf %53 : vector<16x128xf32>
    %55 = arith.addf %44, %54 : vector<16x128xf32>
    %c0_30 = arith.constant 0 : index
    %c5 = arith.constant 5 : index
    %c0_31 = arith.constant 0 : index
    %56 = vector.load %arg3[%c0_30, %c5, %c0_31] : memref<2x32x128xf32, #tpu.memory_space<vmem>>, vector<1x1x128xf32>
    %57 = vector.shape_cast %56 : vector<1x1x128xf32> to vector<1x128xf32>
    %c0_32 = arith.constant 0 : index
    %c0_33 = arith.constant 0 : index
    %c5_34 = arith.constant 5 : index
    %58 = vector.load %arg4[%c0_32, %c0_33, %c5_34] : memref<2x16x32xf32, #tpu.memory_space<vmem>>, vector<1x16x1xf32>
    %59 = vector.shape_cast %58 : vector<1x16x1xf32> to vector<16x1xf32>
    %cst_35 = arith.constant 9.99999997E-7 : f32
    %60 = vector.broadcast %cst_35 : f32 to vector<16x1xf32>
    %61 = arith.subf %59, %60 : vector<16x1xf32>
    %62 = vector.broadcast %57 : vector<1x128xf32> to vector<16x128xf32>
    %63 = vector.broadcast %61 : vector<16x1xf32> to vector<16x128xf32>
    %64 = arith.subf %62, %63 : vector<16x128xf32>
    %65 = math.absf %64 : vector<16x128xf32>
    %66 = arith.addf %55, %65 : vector<16x128xf32>
    %c0_36 = arith.constant 0 : index
    %c6 = arith.constant 6 : index
    %c0_37 = arith.constant 0 : index
    %67 = vector.load %arg3[%c0_36, %c6, %c0_37] : memref<2x32x128xf32, #tpu.memory_space<vmem>>, vector<1x1x128xf32>
    %68 = vector.shape_cast %67 : vector<1x1x128xf32> to vector<1x128xf32>
    %c0_38 = arith.constant 0 : index
    %c0_39 = arith.constant 0 : index
    %c6_40 = arith.constant 6 : index
    %69 = vector.load %arg4[%c0_38, %c0_39, %c6_40] : memref<2x16x32xf32, #tpu.memory_space<vmem>>, vector<1x16x1xf32>
    %70 = vector.shape_cast %69 : vector<1x16x1xf32> to vector<16x1xf32>
    %cst_41 = arith.constant 9.99999997E-7 : f32
    %71 = vector.broadcast %cst_41 : f32 to vector<16x1xf32>
    %72 = arith.subf %70, %71 : vector<16x1xf32>
    %73 = vector.broadcast %68 : vector<1x128xf32> to vector<16x128xf32>
    %74 = vector.broadcast %72 : vector<16x1xf32> to vector<16x128xf32>
    %75 = arith.subf %73, %74 : vector<16x128xf32>
    %76 = math.absf %75 : vector<16x128xf32>
    %77 = arith.addf %66, %76 : vector<16x128xf32>
    %c0_42 = arith.constant 0 : index
    %c7 = arith.constant 7 : index
    %c0_43 = arith.constant 0 : index
    %78 = vector.load %arg3[%c0_42, %c7, %c0_43] : memref<2x32x128xf32, #tpu.memory_space<vmem>>, vector<1x1x128xf32>
    %79 = vector.shape_cast %78 : vector<1x1x128xf32> to vector<1x128xf32>
    %c0_44 = arith.constant 0 : index
    %c0_45 = arith.constant 0 : index
    %c7_46 = arith.constant 7 : index
    %80 = vector.load %arg4[%c0_44, %c0_45, %c7_46] : memref<2x16x32xf32, #tpu.memory_space<vmem>>, vector<1x16x1xf32>
    %81 = vector.shape_cast %80 : vector<1x16x1xf32> to vector<16x1xf32>
    %cst_47 = arith.constant 9.99999997E-7 : f32
    %82 = vector.broadcast %cst_47 : f32 to vector<16x1xf32>
    %83 = arith.subf %81, %82 : vector<16x1xf32>
    %84 = vector.broadcast %79 : vector<1x128xf32> to vector<16x128xf32>
    %85 = vector.broadcast %83 : vector<16x1xf32> to vector<16x128xf32>
    %86 = arith.subf %84, %85 : vector<16x128xf32>
    %87 = math.absf %86 : vector<16x128xf32>
    %88 = arith.addf %77, %87 : vector<16x128xf32>
    %c0_48 = arith.constant 0 : index
    %c8 = arith.constant 8 : index
    %c0_49 = arith.constant 0 : index
    %89 = vector.load %arg3[%c0_48, %c8, %c0_49] : memref<2x32x128xf32, #tpu.memory_space<vmem>>, vector<1x1x128xf32>
    %90 = vector.shape_cast %89 : vector<1x1x128xf32> to vector<1x128xf32>
    %c0_50 = arith.constant 0 : index
    %c0_51 = arith.constant 0 : index
    %c8_52 = arith.constant 8 : index
    %91 = vector.load %arg4[%c0_50, %c0_51, %c8_52] : memref<2x16x32xf32, #tpu.memory_space<vmem>>, vector<1x16x1xf32>
    %92 = vector.shape_cast %91 : vector<1x16x1xf32> to vector<16x1xf32>
    %cst_53 = arith.constant 9.99999997E-7 : f32
    %93 = vector.broadcast %cst_53 : f32 to vector<16x1xf32>
    %94 = arith.subf %92, %93 : vector<16x1xf32>
    %95 = vector.broadcast %90 : vector<1x128xf32> to vector<16x128xf32>
    %96 = vector.broadcast %94 : vector<16x1xf32> to vector<16x128xf32>
    %97 = arith.subf %95, %96 : vector<16x128xf32>
    %98 = math.absf %97 : vector<16x128xf32>
    %99 = arith.addf %88, %98 : vector<16x128xf32>
    %c0_54 = arith.constant 0 : index
    %c9 = arith.constant 9 : index
    %c0_55 = arith.constant 0 : index
    %100 = vector.load %arg3[%c0_54, %c9, %c0_55] : memref<2x32x128xf32, #tpu.memory_space<vmem>>, vector<1x1x128xf32>
    %101 = vector.shape_cast %100 : vector<1x1x128xf32> to vector<1x128xf32>
    %c0_56 = arith.constant 0 : index
    %c0_57 = arith.constant 0 : index
    %c9_58 = arith.constant 9 : index
    %102 = vector.load %arg4[%c0_56, %c0_57, %c9_58] : memref<2x16x32xf32, #tpu.memory_space<vmem>>, vector<1x16x1xf32>
    %103 = vector.shape_cast %102 : vector<1x16x1xf32> to vector<16x1xf32>
    %cst_59 = arith.constant 9.99999997E-7 : f32
    %104 = vector.broadcast %cst_59 : f32 to vector<16x1xf32>
    %105 = arith.subf %103, %104 : vector<16x1xf32>
    %106 = vector.broadcast %101 : vector<1x128xf32> to vector<16x128xf32>
    %107 = vector.broadcast %105 : vector<16x1xf32> to vector<16x128xf32>
    %108 = arith.subf %106, %107 : vector<16x128xf32>
    %109 = math.absf %108 : vector<16x128xf32>
    %110 = arith.addf %99, %109 : vector<16x128xf32>
    %c0_60 = arith.constant 0 : index
    %c10 = arith.constant 10 : index
    %c0_61 = arith.constant 0 : index
    %111 = vector.load %arg3[%c0_60, %c10, %c0_61] : memref<2x32x128xf32, #tpu.memory_space<vmem>>, vector<1x1x128xf32>
    %112 = vector.shape_cast %111 : vector<1x1x128xf32> to vector<1x128xf32>
    %c0_62 = arith.constant 0 : index
    %c0_63 = arith.constant 0 : index
    %c10_64 = arith.constant 10 : index
    %113 = vector.load %arg4[%c0_62, %c0_63, %c10_64] : memref<2x16x32xf32, #tpu.memory_space<vmem>>, vector<1x16x1xf32>
    %114 = vector.shape_cast %113 : vector<1x16x1xf32> to vector<16x1xf32>
    %cst_65 = arith.constant 9.99999997E-7 : f32
    %115 = vector.broadcast %cst_65 : f32 to vector<16x1xf32>
    %116 = arith.subf %114, %115 : vector<16x1xf32>
    %117 = vector.broadcast %112 : vector<1x128xf32> to vector<16x128xf32>
    %118 = vector.broadcast %116 : vector<16x1xf32> to vector<16x128xf32>
    %119 = arith.subf %117, %118 : vector<16x128xf32>
    %120 = math.absf %119 : vector<16x128xf32>
    %121 = arith.addf %110, %120 : vector<16x128xf32>
    %c0_66 = arith.constant 0 : index
    %c11 = arith.constant 11 : index
    %c0_67 = arith.constant 0 : index
    %122 = vector.load %arg3[%c0_66, %c11, %c0_67] : memref<2x32x128xf32, #tpu.memory_space<vmem>>, vector<1x1x128xf32>
    %123 = vector.shape_cast %122 : vector<1x1x128xf32> to vector<1x128xf32>
    %c0_68 = arith.constant 0 : index
    %c0_69 = arith.constant 0 : index
    %c11_70 = arith.constant 11 : index
    %124 = vector.load %arg4[%c0_68, %c0_69, %c11_70] : memref<2x16x32xf32, #tpu.memory_space<vmem>>, vector<1x16x1xf32>
    %125 = vector.shape_cast %124 : vector<1x16x1xf32> to vector<16x1xf32>
    %cst_71 = arith.constant 9.99999997E-7 : f32
    %126 = vector.broadcast %cst_71 : f32 to vector<16x1xf32>
    %127 = arith.subf %125, %126 : vector<16x1xf32>
    %128 = vector.broadcast %123 : vector<1x128xf32> to vector<16x128xf32>
    %129 = vector.broadcast %127 : vector<16x1xf32> to vector<16x128xf32>
    %130 = arith.subf %128, %129 : vector<16x128xf32>
    %131 = math.absf %130 : vector<16x128xf32>
    %132 = arith.addf %121, %131 : vector<16x128xf32>
    %c0_72 = arith.constant 0 : index
    %c12 = arith.constant 12 : index
    %c0_73 = arith.constant 0 : index
    %133 = vector.load %arg3[%c0_72, %c12, %c0_73] : memref<2x32x128xf32, #tpu.memory_space<vmem>>, vector<1x1x128xf32>
    %134 = vector.shape_cast %133 : vector<1x1x128xf32> to vector<1x128xf32>
    %c0_74 = arith.constant 0 : index
    %c0_75 = arith.constant 0 : index
    %c12_76 = arith.constant 12 : index
    %135 = vector.load %arg4[%c0_74, %c0_75, %c12_76] : memref<2x16x32xf32, #tpu.memory_space<vmem>>, vector<1x16x1xf32>
    %136 = vector.shape_cast %135 : vector<1x16x1xf32> to vector<16x1xf32>
    %cst_77 = arith.constant 9.99999997E-7 : f32
    %137 = vector.broadcast %cst_77 : f32 to vector<16x1xf32>
    %138 = arith.subf %136, %137 : vector<16x1xf32>
    %139 = vector.broadcast %134 : vector<1x128xf32> to vector<16x128xf32>
    %140 = vector.broadcast %138 : vector<16x1xf32> to vector<16x128xf32>
    %141 = arith.subf %139, %140 : vector<16x128xf32>
    %142 = math.absf %141 : vector<16x128xf32>
    %143 = arith.addf %132, %142 : vector<16x128xf32>
    %c0_78 = arith.constant 0 : index
    %c13 = arith.constant 13 : index
    %c0_79 = arith.constant 0 : index
    %144 = vector.load %arg3[%c0_78, %c13, %c0_79] : memref<2x32x128xf32, #tpu.memory_space<vmem>>, vector<1x1x128xf32>
    %145 = vector.shape_cast %144 : vector<1x1x128xf32> to vector<1x128xf32>
    %c0_80 = arith.constant 0 : index
    %c0_81 = arith.constant 0 : index
    %c13_82 = arith.constant 13 : index
    %146 = vector.load %arg4[%c0_80, %c0_81, %c13_82] : memref<2x16x32xf32, #tpu.memory_space<vmem>>, vector<1x16x1xf32>
    %147 = vector.shape_cast %146 : vector<1x16x1xf32> to vector<16x1xf32>
    %cst_83 = arith.constant 9.99999997E-7 : f32
    %148 = vector.broadcast %cst_83 : f32 to vector<16x1xf32>
    %149 = arith.subf %147, %148 : vector<16x1xf32>
    %150 = vector.broadcast %145 : vector<1x128xf32> to vector<16x128xf32>
    %151 = vector.broadcast %149 : vector<16x1xf32> to vector<16x128xf32>
    %152 = arith.subf %150, %151 : vector<16x128xf32>
    %153 = math.absf %152 : vector<16x128xf32>
    %154 = arith.addf %143, %153 : vector<16x128xf32>
    %c0_84 = arith.constant 0 : index
    %c14 = arith.constant 14 : index
    %c0_85 = arith.constant 0 : index
    %155 = vector.load %arg3[%c0_84, %c14, %c0_85] : memref<2x32x128xf32, #tpu.memory_space<vmem>>, vector<1x1x128xf32>
    %156 = vector.shape_cast %155 : vector<1x1x128xf32> to vector<1x128xf32>
    %c0_86 = arith.constant 0 : index
    %c0_87 = arith.constant 0 : index
    %c14_88 = arith.constant 14 : index
    %157 = vector.load %arg4[%c0_86, %c0_87, %c14_88] : memref<2x16x32xf32, #tpu.memory_space<vmem>>, vector<1x16x1xf32>
    %158 = vector.shape_cast %157 : vector<1x16x1xf32> to vector<16x1xf32>
    %cst_89 = arith.constant 9.99999997E-7 : f32
    %159 = vector.broadcast %cst_89 : f32 to vector<16x1xf32>
    %160 = arith.subf %158, %159 : vector<16x1xf32>
    %161 = vector.broadcast %156 : vector<1x128xf32> to vector<16x128xf32>
    %162 = vector.broadcast %160 : vector<16x1xf32> to vector<16x128xf32>
    %163 = arith.subf %161, %162 : vector<16x128xf32>
    %164 = math.absf %163 : vector<16x128xf32>
    %165 = arith.addf %154, %164 : vector<16x128xf32>
    %c0_90 = arith.constant 0 : index
    %c15 = arith.constant 15 : index
    %c0_91 = arith.constant 0 : index
    %166 = vector.load %arg3[%c0_90, %c15, %c0_91] : memref<2x32x128xf32, #tpu.memory_space<vmem>>, vector<1x1x128xf32>
    %167 = vector.shape_cast %166 : vector<1x1x128xf32> to vector<1x128xf32>
    %c0_92 = arith.constant 0 : index
    %c0_93 = arith.constant 0 : index
    %c15_94 = arith.constant 15 : index
    %168 = vector.load %arg4[%c0_92, %c0_93, %c15_94] : memref<2x16x32xf32, #tpu.memory_space<vmem>>, vector<1x16x1xf32>
    %169 = vector.shape_cast %168 : vector<1x16x1xf32> to vector<16x1xf32>
    %cst_95 = arith.constant 9.99999997E-7 : f32
    %170 = vector.broadcast %cst_95 : f32 to vector<16x1xf32>
    %171 = arith.subf %169, %170 : vector<16x1xf32>
    %172 = vector.broadcast %167 : vector<1x128xf32> to vector<16x128xf32>
    %173 = vector.broadcast %171 : vector<16x1xf32> to vector<16x128xf32>
    %174 = arith.subf %172, %173 : vector<16x128xf32>
    %175 = math.absf %174 : vector<16x128xf32>
    %176 = arith.addf %165, %175 : vector<16x128xf32>
    %c0_96 = arith.constant 0 : index
    %c16 = arith.constant 16 : index
    %c0_97 = arith.constant 0 : index
    %177 = vector.load %arg3[%c0_96, %c16, %c0_97] : memref<2x32x128xf32, #tpu.memory_space<vmem>>, vector<1x1x128xf32>
    %178 = vector.shape_cast %177 : vector<1x1x128xf32> to vector<1x128xf32>
    %c0_98 = arith.constant 0 : index
    %c0_99 = arith.constant 0 : index
    %c16_100 = arith.constant 16 : index
    %179 = vector.load %arg4[%c0_98, %c0_99, %c16_100] : memref<2x16x32xf32, #tpu.memory_space<vmem>>, vector<1x16x1xf32>
    %180 = vector.shape_cast %179 : vector<1x16x1xf32> to vector<16x1xf32>
    %cst_101 = arith.constant 9.99999997E-7 : f32
    %181 = vector.broadcast %cst_101 : f32 to vector<16x1xf32>
    %182 = arith.subf %180, %181 : vector<16x1xf32>
    %183 = vector.broadcast %178 : vector<1x128xf32> to vector<16x128xf32>
    %184 = vector.broadcast %182 : vector<16x1xf32> to vector<16x128xf32>
    %185 = arith.subf %183, %184 : vector<16x128xf32>
    %186 = math.absf %185 : vector<16x128xf32>
    %187 = arith.addf %176, %186 : vector<16x128xf32>
    %c0_102 = arith.constant 0 : index
    %c17 = arith.constant 17 : index
    %c0_103 = arith.constant 0 : index
    %188 = vector.load %arg3[%c0_102, %c17, %c0_103] : memref<2x32x128xf32, #tpu.memory_space<vmem>>, vector<1x1x128xf32>
    %189 = vector.shape_cast %188 : vector<1x1x128xf32> to vector<1x128xf32>
    %c0_104 = arith.constant 0 : index
    %c0_105 = arith.constant 0 : index
    %c17_106 = arith.constant 17 : index
    %190 = vector.load %arg4[%c0_104, %c0_105, %c17_106] : memref<2x16x32xf32, #tpu.memory_space<vmem>>, vector<1x16x1xf32>
    %191 = vector.shape_cast %190 : vector<1x16x1xf32> to vector<16x1xf32>
    %cst_107 = arith.constant 9.99999997E-7 : f32
    %192 = vector.broadcast %cst_107 : f32 to vector<16x1xf32>
    %193 = arith.subf %191, %192 : vector<16x1xf32>
    %194 = vector.broadcast %189 : vector<1x128xf32> to vector<16x128xf32>
    %195 = vector.broadcast %193 : vector<16x1xf32> to vector<16x128xf32>
    %196 = arith.subf %194, %195 : vector<16x128xf32>
    %197 = math.absf %196 : vector<16x128xf32>
    %198 = arith.addf %187, %197 : vector<16x128xf32>
    %c0_108 = arith.constant 0 : index
    %c18 = arith.constant 18 : index
    %c0_109 = arith.constant 0 : index
    %199 = vector.load %arg3[%c0_108, %c18, %c0_109] : memref<2x32x128xf32, #tpu.memory_space<vmem>>, vector<1x1x128xf32>
    %200 = vector.shape_cast %199 : vector<1x1x128xf32> to vector<1x128xf32>
    %c0_110 = arith.constant 0 : index
    %c0_111 = arith.constant 0 : index
    %c18_112 = arith.constant 18 : index
    %201 = vector.load %arg4[%c0_110, %c0_111, %c18_112] : memref<2x16x32xf32, #tpu.memory_space<vmem>>, vector<1x16x1xf32>
    %202 = vector.shape_cast %201 : vector<1x16x1xf32> to vector<16x1xf32>
    %cst_113 = arith.constant 9.99999997E-7 : f32
    %203 = vector.broadcast %cst_113 : f32 to vector<16x1xf32>
    %204 = arith.subf %202, %203 : vector<16x1xf32>
    %205 = vector.broadcast %200 : vector<1x128xf32> to vector<16x128xf32>
    %206 = vector.broadcast %204 : vector<16x1xf32> to vector<16x128xf32>
    %207 = arith.subf %205, %206 : vector<16x128xf32>
    %208 = math.absf %207 : vector<16x128xf32>
    %209 = arith.addf %198, %208 : vector<16x128xf32>
    %c0_114 = arith.constant 0 : index
    %c19 = arith.constant 19 : index
    %c0_115 = arith.constant 0 : index
    %210 = vector.load %arg3[%c0_114, %c19, %c0_115] : memref<2x32x128xf32, #tpu.memory_space<vmem>>, vector<1x1x128xf32>
    %211 = vector.shape_cast %210 : vector<1x1x128xf32> to vector<1x128xf32>
    %c0_116 = arith.constant 0 : index
    %c0_117 = arith.constant 0 : index
    %c19_118 = arith.constant 19 : index
    %212 = vector.load %arg4[%c0_116, %c0_117, %c19_118] : memref<2x16x32xf32, #tpu.memory_space<vmem>>, vector<1x16x1xf32>
    %213 = vector.shape_cast %212 : vector<1x16x1xf32> to vector<16x1xf32>
    %cst_119 = arith.constant 9.99999997E-7 : f32
    %214 = vector.broadcast %cst_119 : f32 to vector<16x1xf32>
    %215 = arith.subf %213, %214 : vector<16x1xf32>
    %216 = vector.broadcast %211 : vector<1x128xf32> to vector<16x128xf32>
    %217 = vector.broadcast %215 : vector<16x1xf32> to vector<16x128xf32>
    %218 = arith.subf %216, %217 : vector<16x128xf32>
    %219 = math.absf %218 : vector<16x128xf32>
    %220 = arith.addf %209, %219 : vector<16x128xf32>
    %c0_120 = arith.constant 0 : index
    %c20 = arith.constant 20 : index
    %c0_121 = arith.constant 0 : index
    %221 = vector.load %arg3[%c0_120, %c20, %c0_121] : memref<2x32x128xf32, #tpu.memory_space<vmem>>, vector<1x1x128xf32>
    %222 = vector.shape_cast %221 : vector<1x1x128xf32> to vector<1x128xf32>
    %c0_122 = arith.constant 0 : index
    %c0_123 = arith.constant 0 : index
    %c20_124 = arith.constant 20 : index
    %223 = vector.load %arg4[%c0_122, %c0_123, %c20_124] : memref<2x16x32xf32, #tpu.memory_space<vmem>>, vector<1x16x1xf32>
    %224 = vector.shape_cast %223 : vector<1x16x1xf32> to vector<16x1xf32>
    %cst_125 = arith.constant 9.99999997E-7 : f32
    %225 = vector.broadcast %cst_125 : f32 to vector<16x1xf32>
    %226 = arith.subf %224, %225 : vector<16x1xf32>
    %227 = vector.broadcast %222 : vector<1x128xf32> to vector<16x128xf32>
    %228 = vector.broadcast %226 : vector<16x1xf32> to vector<16x128xf32>
    %229 = arith.subf %227, %228 : vector<16x128xf32>
    %230 = math.absf %229 : vector<16x128xf32>
    %231 = arith.addf %220, %230 : vector<16x128xf32>
    %c0_126 = arith.constant 0 : index
    %c21 = arith.constant 21 : index
    %c0_127 = arith.constant 0 : index
    %232 = vector.load %arg3[%c0_126, %c21, %c0_127] : memref<2x32x128xf32, #tpu.memory_space<vmem>>, vector<1x1x128xf32>
    %233 = vector.shape_cast %232 : vector<1x1x128xf32> to vector<1x128xf32>
    %c0_128 = arith.constant 0 : index
    %c0_129 = arith.constant 0 : index
    %c21_130 = arith.constant 21 : index
    %234 = vector.load %arg4[%c0_128, %c0_129, %c21_130] : memref<2x16x32xf32, #tpu.memory_space<vmem>>, vector<1x16x1xf32>
    %235 = vector.shape_cast %234 : vector<1x16x1xf32> to vector<16x1xf32>
    %cst_131 = arith.constant 9.99999997E-7 : f32
    %236 = vector.broadcast %cst_131 : f32 to vector<16x1xf32>
    %237 = arith.subf %235, %236 : vector<16x1xf32>
    %238 = vector.broadcast %233 : vector<1x128xf32> to vector<16x128xf32>
    %239 = vector.broadcast %237 : vector<16x1xf32> to vector<16x128xf32>
    %240 = arith.subf %238, %239 : vector<16x128xf32>
    %241 = math.absf %240 : vector<16x128xf32>
    %242 = arith.addf %231, %241 : vector<16x128xf32>
    %c0_132 = arith.constant 0 : index
    %c22 = arith.constant 22 : index
    %c0_133 = arith.constant 0 : index
    %243 = vector.load %arg3[%c0_132, %c22, %c0_133] : memref<2x32x128xf32, #tpu.memory_space<vmem>>, vector<1x1x128xf32>
    %244 = vector.shape_cast %243 : vector<1x1x128xf32> to vector<1x128xf32>
    %c0_134 = arith.constant 0 : index
    %c0_135 = arith.constant 0 : index
    %c22_136 = arith.constant 22 : index
    %245 = vector.load %arg4[%c0_134, %c0_135, %c22_136] : memref<2x16x32xf32, #tpu.memory_space<vmem>>, vector<1x16x1xf32>
    %246 = vector.shape_cast %245 : vector<1x16x1xf32> to vector<16x1xf32>
    %cst_137 = arith.constant 9.99999997E-7 : f32
    %247 = vector.broadcast %cst_137 : f32 to vector<16x1xf32>
    %248 = arith.subf %246, %247 : vector<16x1xf32>
    %249 = vector.broadcast %244 : vector<1x128xf32> to vector<16x128xf32>
    %250 = vector.broadcast %248 : vector<16x1xf32> to vector<16x128xf32>
    %251 = arith.subf %249, %250 : vector<16x128xf32>
    %252 = math.absf %251 : vector<16x128xf32>
    %253 = arith.addf %242, %252 : vector<16x128xf32>
    %c0_138 = arith.constant 0 : index
    %c23 = arith.constant 23 : index
    %c0_139 = arith.constant 0 : index
    %254 = vector.load %arg3[%c0_138, %c23, %c0_139] : memref<2x32x128xf32, #tpu.memory_space<vmem>>, vector<1x1x128xf32>
    %255 = vector.shape_cast %254 : vector<1x1x128xf32> to vector<1x128xf32>
    %c0_140 = arith.constant 0 : index
    %c0_141 = arith.constant 0 : index
    %c23_142 = arith.constant 23 : index
    %256 = vector.load %arg4[%c0_140, %c0_141, %c23_142] : memref<2x16x32xf32, #tpu.memory_space<vmem>>, vector<1x16x1xf32>
    %257 = vector.shape_cast %256 : vector<1x16x1xf32> to vector<16x1xf32>
    %cst_143 = arith.constant 9.99999997E-7 : f32
    %258 = vector.broadcast %cst_143 : f32 to vector<16x1xf32>
    %259 = arith.subf %257, %258 : vector<16x1xf32>
    %260 = vector.broadcast %255 : vector<1x128xf32> to vector<16x128xf32>
    %261 = vector.broadcast %259 : vector<16x1xf32> to vector<16x128xf32>
    %262 = arith.subf %260, %261 : vector<16x128xf32>
    %263 = math.absf %262 : vector<16x128xf32>
    %264 = arith.addf %253, %263 : vector<16x128xf32>
    %c0_144 = arith.constant 0 : index
    %c24 = arith.constant 24 : index
    %c0_145 = arith.constant 0 : index
    %265 = vector.load %arg3[%c0_144, %c24, %c0_145] : memref<2x32x128xf32, #tpu.memory_space<vmem>>, vector<1x1x128xf32>
    %266 = vector.shape_cast %265 : vector<1x1x128xf32> to vector<1x128xf32>
    %c0_146 = arith.constant 0 : index
    %c0_147 = arith.constant 0 : index
    %c24_148 = arith.constant 24 : index
    %267 = vector.load %arg4[%c0_146, %c0_147, %c24_148] : memref<2x16x32xf32, #tpu.memory_space<vmem>>, vector<1x16x1xf32>
    %268 = vector.shape_cast %267 : vector<1x16x1xf32> to vector<16x1xf32>
    %cst_149 = arith.constant 9.99999997E-7 : f32
    %269 = vector.broadcast %cst_149 : f32 to vector<16x1xf32>
    %270 = arith.subf %268, %269 : vector<16x1xf32>
    %271 = vector.broadcast %266 : vector<1x128xf32> to vector<16x128xf32>
    %272 = vector.broadcast %270 : vector<16x1xf32> to vector<16x128xf32>
    %273 = arith.subf %271, %272 : vector<16x128xf32>
    %274 = math.absf %273 : vector<16x128xf32>
    %275 = arith.addf %264, %274 : vector<16x128xf32>
    %c0_150 = arith.constant 0 : index
    %c25 = arith.constant 25 : index
    %c0_151 = arith.constant 0 : index
    %276 = vector.load %arg3[%c0_150, %c25, %c0_151] : memref<2x32x128xf32, #tpu.memory_space<vmem>>, vector<1x1x128xf32>
    %277 = vector.shape_cast %276 : vector<1x1x128xf32> to vector<1x128xf32>
    %c0_152 = arith.constant 0 : index
    %c0_153 = arith.constant 0 : index
    %c25_154 = arith.constant 25 : index
    %278 = vector.load %arg4[%c0_152, %c0_153, %c25_154] : memref<2x16x32xf32, #tpu.memory_space<vmem>>, vector<1x16x1xf32>
    %279 = vector.shape_cast %278 : vector<1x16x1xf32> to vector<16x1xf32>
    %cst_155 = arith.constant 9.99999997E-7 : f32
    %280 = vector.broadcast %cst_155 : f32 to vector<16x1xf32>
    %281 = arith.subf %279, %280 : vector<16x1xf32>
    %282 = vector.broadcast %277 : vector<1x128xf32> to vector<16x128xf32>
    %283 = vector.broadcast %281 : vector<16x1xf32> to vector<16x128xf32>
    %284 = arith.subf %282, %283 : vector<16x128xf32>
    %285 = math.absf %284 : vector<16x128xf32>
    %286 = arith.addf %275, %285 : vector<16x128xf32>
    %c0_156 = arith.constant 0 : index
    %c26 = arith.constant 26 : index
    %c0_157 = arith.constant 0 : index
    %287 = vector.load %arg3[%c0_156, %c26, %c0_157] : memref<2x32x128xf32, #tpu.memory_space<vmem>>, vector<1x1x128xf32>
    %288 = vector.shape_cast %287 : vector<1x1x128xf32> to vector<1x128xf32>
    %c0_158 = arith.constant 0 : index
    %c0_159 = arith.constant 0 : index
    %c26_160 = arith.constant 26 : index
    %289 = vector.load %arg4[%c0_158, %c0_159, %c26_160] : memref<2x16x32xf32, #tpu.memory_space<vmem>>, vector<1x16x1xf32>
    %290 = vector.shape_cast %289 : vector<1x16x1xf32> to vector<16x1xf32>
    %cst_161 = arith.constant 9.99999997E-7 : f32
    %291 = vector.broadcast %cst_161 : f32 to vector<16x1xf32>
    %292 = arith.subf %290, %291 : vector<16x1xf32>
    %293 = vector.broadcast %288 : vector<1x128xf32> to vector<16x128xf32>
    %294 = vector.broadcast %292 : vector<16x1xf32> to vector<16x128xf32>
    %295 = arith.subf %293, %294 : vector<16x128xf32>
    %296 = math.absf %295 : vector<16x128xf32>
    %297 = arith.addf %286, %296 : vector<16x128xf32>
    %c0_162 = arith.constant 0 : index
    %c27 = arith.constant 27 : index
    %c0_163 = arith.constant 0 : index
    %298 = vector.load %arg3[%c0_162, %c27, %c0_163] : memref<2x32x128xf32, #tpu.memory_space<vmem>>, vector<1x1x128xf32>
    %299 = vector.shape_cast %298 : vector<1x1x128xf32> to vector<1x128xf32>
    %c0_164 = arith.constant 0 : index
    %c0_165 = arith.constant 0 : index
    %c27_166 = arith.constant 27 : index
    %300 = vector.load %arg4[%c0_164, %c0_165, %c27_166] : memref<2x16x32xf32, #tpu.memory_space<vmem>>, vector<1x16x1xf32>
    %301 = vector.shape_cast %300 : vector<1x16x1xf32> to vector<16x1xf32>
    %cst_167 = arith.constant 9.99999997E-7 : f32
    %302 = vector.broadcast %cst_167 : f32 to vector<16x1xf32>
    %303 = arith.subf %301, %302 : vector<16x1xf32>
    %304 = vector.broadcast %299 : vector<1x128xf32> to vector<16x128xf32>
    %305 = vector.broadcast %303 : vector<16x1xf32> to vector<16x128xf32>
    %306 = arith.subf %304, %305 : vector<16x128xf32>
    %307 = math.absf %306 : vector<16x128xf32>
    %308 = arith.addf %297, %307 : vector<16x128xf32>
    %c0_168 = arith.constant 0 : index
    %c28 = arith.constant 28 : index
    %c0_169 = arith.constant 0 : index
    %309 = vector.load %arg3[%c0_168, %c28, %c0_169] : memref<2x32x128xf32, #tpu.memory_space<vmem>>, vector<1x1x128xf32>
    %310 = vector.shape_cast %309 : vector<1x1x128xf32> to vector<1x128xf32>
    %c0_170 = arith.constant 0 : index
    %c0_171 = arith.constant 0 : index
    %c28_172 = arith.constant 28 : index
    %311 = vector.load %arg4[%c0_170, %c0_171, %c28_172] : memref<2x16x32xf32, #tpu.memory_space<vmem>>, vector<1x16x1xf32>
    %312 = vector.shape_cast %311 : vector<1x16x1xf32> to vector<16x1xf32>
    %cst_173 = arith.constant 9.99999997E-7 : f32
    %313 = vector.broadcast %cst_173 : f32 to vector<16x1xf32>
    %314 = arith.subf %312, %313 : vector<16x1xf32>
    %315 = vector.broadcast %310 : vector<1x128xf32> to vector<16x128xf32>
    %316 = vector.broadcast %314 : vector<16x1xf32> to vector<16x128xf32>
    %317 = arith.subf %315, %316 : vector<16x128xf32>
    %318 = math.absf %317 : vector<16x128xf32>
    %319 = arith.addf %308, %318 : vector<16x128xf32>
    %c0_174 = arith.constant 0 : index
    %c29 = arith.constant 29 : index
    %c0_175 = arith.constant 0 : index
    %320 = vector.load %arg3[%c0_174, %c29, %c0_175] : memref<2x32x128xf32, #tpu.memory_space<vmem>>, vector<1x1x128xf32>
    %321 = vector.shape_cast %320 : vector<1x1x128xf32> to vector<1x128xf32>
    %c0_176 = arith.constant 0 : index
    %c0_177 = arith.constant 0 : index
    %c29_178 = arith.constant 29 : index
    %322 = vector.load %arg4[%c0_176, %c0_177, %c29_178] : memref<2x16x32xf32, #tpu.memory_space<vmem>>, vector<1x16x1xf32>
    %323 = vector.shape_cast %322 : vector<1x16x1xf32> to vector<16x1xf32>
    %cst_179 = arith.constant 9.99999997E-7 : f32
    %324 = vector.broadcast %cst_179 : f32 to vector<16x1xf32>
    %325 = arith.subf %323, %324 : vector<16x1xf32>
    %326 = vector.broadcast %321 : vector<1x128xf32> to vector<16x128xf32>
    %327 = vector.broadcast %325 : vector<16x1xf32> to vector<16x128xf32>
    %328 = arith.subf %326, %327 : vector<16x128xf32>
    %329 = math.absf %328 : vector<16x128xf32>
    %330 = arith.addf %319, %329 : vector<16x128xf32>
    %c0_180 = arith.constant 0 : index
    %c30 = arith.constant 30 : index
    %c0_181 = arith.constant 0 : index
    %331 = vector.load %arg3[%c0_180, %c30, %c0_181] : memref<2x32x128xf32, #tpu.memory_space<vmem>>, vector<1x1x128xf32>
    %332 = vector.shape_cast %331 : vector<1x1x128xf32> to vector<1x128xf32>
    %c0_182 = arith.constant 0 : index
    %c0_183 = arith.constant 0 : index
    %c30_184 = arith.constant 30 : index
    %333 = vector.load %arg4[%c0_182, %c0_183, %c30_184] : memref<2x16x32xf32, #tpu.memory_space<vmem>>, vector<1x16x1xf32>
    %334 = vector.shape_cast %333 : vector<1x16x1xf32> to vector<16x1xf32>
    %cst_185 = arith.constant 9.99999997E-7 : f32
    %335 = vector.broadcast %cst_185 : f32 to vector<16x1xf32>
    %336 = arith.subf %334, %335 : vector<16x1xf32>
    %337 = vector.broadcast %332 : vector<1x128xf32> to vector<16x128xf32>
    %338 = vector.broadcast %336 : vector<16x1xf32> to vector<16x128xf32>
    %339 = arith.subf %337, %338 : vector<16x128xf32>
    %340 = math.absf %339 : vector<16x128xf32>
    %341 = arith.addf %330, %340 : vector<16x128xf32>
    %c0_186 = arith.constant 0 : index
    %c31 = arith.constant 31 : index
    %c0_187 = arith.constant 0 : index
    %342 = vector.load %arg3[%c0_186, %c31, %c0_187] : memref<2x32x128xf32, #tpu.memory_space<vmem>>, vector<1x1x128xf32>
    %343 = vector.shape_cast %342 : vector<1x1x128xf32> to vector<1x128xf32>
    %c0_188 = arith.constant 0 : index
    %c0_189 = arith.constant 0 : index
    %c31_190 = arith.constant 31 : index
    %344 = vector.load %arg4[%c0_188, %c0_189, %c31_190] : memref<2x16x32xf32, #tpu.memory_space<vmem>>, vector<1x16x1xf32>
    %345 = vector.shape_cast %344 : vector<1x16x1xf32> to vector<16x1xf32>
    %cst_191 = arith.constant 9.99999997E-7 : f32
    %346 = vector.broadcast %cst_191 : f32 to vector<16x1xf32>
    %347 = arith.subf %345, %346 : vector<16x1xf32>
    %348 = vector.broadcast %343 : vector<1x128xf32> to vector<16x128xf32>
    %349 = vector.broadcast %347 : vector<16x1xf32> to vector<16x128xf32>
    %350 = arith.subf %348, %349 : vector<16x128xf32>
    %351 = math.absf %350 : vector<16x128xf32>
    %352 = arith.addf %341, %351 : vector<16x128xf32>
    %c0_192 = arith.constant 0 : index
    %c0_193 = arith.constant 0 : index
    %c0_194 = arith.constant 0 : index
    %353 = vector.load %arg5[%c0_192, %c0_193, %c0_194] : memref<2x16x128xf32, #tpu.memory_space<vmem>>, vector<1x16x128xf32>
    %354 = vector.shape_cast %353 : vector<1x16x128xf32> to vector<16x128xf32>
    %355 = vector.shape_cast %352 : vector<16x128xf32> to vector<1x16x128xf32>
    tpu.vector_store %arg5[%c0_192, %c0_193, %c0_194], %355 {strides = array<i32>} : memref<2x16x128xf32, #tpu.memory_space<vmem>>, vector<1x16x128xf32>,
    %cst_195 = arith.constant 0.000000e+00 : f32
    %356 = vector.broadcast %cst_195 : f32 to vector<16x128xf32>
    %c1_196 = arith.constant 1 : index
    %c0_197 = arith.constant 0 : index
    %c0_198 = arith.constant 0 : index
    %357 = vector.load %arg3[%c1_196, %c0_197, %c0_198] : memref<2x32x128xf32, #tpu.memory_space<vmem>>, vector<1x1x128xf32>
    %358 = vector.shape_cast %357 : vector<1x1x128xf32> to vector<1x128xf32>
    %c1_199 = arith.constant 1 : index
    %c0_200 = arith.constant 0 : index
    %c0_201 = arith.constant 0 : index
    %359 = vector.load %arg4[%c1_199, %c0_200, %c0_201] : memref<2x16x32xf32, #tpu.memory_space<vmem>>, vector<1x16x1xf32>
    %360 = vector.shape_cast %359 : vector<1x16x1xf32> to vector<16x1xf32>
    %cst_202 = arith.constant 9.99999997E-7 : f32
    %361 = vector.broadcast %cst_202 : f32 to vector<16x1xf32>
    %362 = arith.subf %360, %361 : vector<16x1xf32>
    %363 = vector.broadcast %358 : vector<1x128xf32> to vector<16x128xf32>
    %364 = vector.broadcast %362 : vector<16x1xf32> to vector<16x128xf32>
    %365 = arith.subf %363, %364 : vector<16x128xf32>
    %366 = math.absf %365 : vector<16x128xf32>
    %367 = arith.addf %356, %366 : vector<16x128xf32>
    %c1_203 = arith.constant 1 : index
    %c1_204 = arith.constant 1 : index
    %c0_205 = arith.constant 0 : index
    %368 = vector.load %arg3[%c1_203, %c1_204, %c0_205] : memref<2x32x128xf32, #tpu.memory_space<vmem>>, vector<1x1x128xf32>
    %369 = vector.shape_cast %368 : vector<1x1x128xf32> to vector<1x128xf32>
    %c1_206 = arith.constant 1 : index
    %c0_207 = arith.constant 0 : index
    %c1_208 = arith.constant 1 : index
    %370 = vector.load %arg4[%c1_206, %c0_207, %c1_208] : memref<2x16x32xf32, #tpu.memory_space<vmem>>, vector<1x16x1xf32>
    %371 = vector.shape_cast %370 : vector<1x16x1xf32> to vector<16x1xf32>
    %cst_209 = arith.constant 9.99999997E-7 : f32
    %372 = vector.broadcast %cst_209 : f32 to vector<16x1xf32>
    %373 = arith.subf %371, %372 : vector<16x1xf32>
    %374 = vector.broadcast %369 : vector<1x128xf32> to vector<16x128xf32>
    %375 = vector.broadcast %373 : vector<16x1xf32> to vector<16x128xf32>
    %376 = arith.subf %374, %375 : vector<16x128xf32>
    %377 = math.absf %376 : vector<16x128xf32>
    %378 = arith.addf %367, %377 : vector<16x128xf32>
    %c1_210 = arith.constant 1 : index
    %c2_211 = arith.constant 2 : index
    %c0_212 = arith.constant 0 : index
    %379 = vector.load %arg3[%c1_210, %c2_211, %c0_212] : memref<2x32x128xf32, #tpu.memory_space<vmem>>, vector<1x1x128xf32>
    %380 = vector.shape_cast %379 : vector<1x1x128xf32> to vector<1x128xf32>
    %c1_213 = arith.constant 1 : index
    %c0_214 = arith.constant 0 : index
    %c2_215 = arith.constant 2 : index
    %381 = vector.load %arg4[%c1_213, %c0_214, %c2_215] : memref<2x16x32xf32, #tpu.memory_space<vmem>>, vector<1x16x1xf32>
    %382 = vector.shape_cast %381 : vector<1x16x1xf32> to vector<16x1xf32>
    %cst_216 = arith.constant 9.99999997E-7 : f32
    %383 = vector.broadcast %cst_216 : f32 to vector<16x1xf32>
    %384 = arith.subf %382, %383 : vector<16x1xf32>
    %385 = vector.broadcast %380 : vector<1x128xf32> to vector<16x128xf32>
    %386 = vector.broadcast %384 : vector<16x1xf32> to vector<16x128xf32>
    %387 = arith.subf %385, %386 : vector<16x128xf32>
    %388 = math.absf %387 : vector<16x128xf32>
    %389 = arith.addf %378, %388 : vector<16x128xf32>
    %c1_217 = arith.constant 1 : index
    %c3_218 = arith.constant 3 : index
    %c0_219 = arith.constant 0 : index
    %390 = vector.load %arg3[%c1_217, %c3_218, %c0_219] : memref<2x32x128xf32, #tpu.memory_space<vmem>>, vector<1x1x128xf32>
    %391 = vector.shape_cast %390 : vector<1x1x128xf32> to vector<1x128xf32>
    %c1_220 = arith.constant 1 : index
    %c0_221 = arith.constant 0 : index
    %c3_222 = arith.constant 3 : index
    %392 = vector.load %arg4[%c1_220, %c0_221, %c3_222] : memref<2x16x32xf32, #tpu.memory_space<vmem>>, vector<1x16x1xf32>
    %393 = vector.shape_cast %392 : vector<1x16x1xf32> to vector<16x1xf32>
    %cst_223 = arith.constant 9.99999997E-7 : f32
    %394 = vector.broadcast %cst_223 : f32 to vector<16x1xf32>
    %395 = arith.subf %393, %394 : vector<16x1xf32>
    %396 = vector.broadcast %391 : vector<1x128xf32> to vector<16x128xf32>
    %397 = vector.broadcast %395 : vector<16x1xf32> to vector<16x128xf32>
    %398 = arith.subf %396, %397 : vector<16x128xf32>
    %399 = math.absf %398 : vector<16x128xf32>
    %400 = arith.addf %389, %399 : vector<16x128xf32>
    %c1_224 = arith.constant 1 : index
    %c4_225 = arith.constant 4 : index
    %c0_226 = arith.constant 0 : index
    %401 = vector.load %arg3[%c1_224, %c4_225, %c0_226] : memref<2x32x128xf32, #tpu.memory_space<vmem>>, vector<1x1x128xf32>
    %402 = vector.shape_cast %401 : vector<1x1x128xf32> to vector<1x128xf32>
    %c1_227 = arith.constant 1 : index
    %c0_228 = arith.constant 0 : index
    %c4_229 = arith.constant 4 : index
    %403 = vector.load %arg4[%c1_227, %c0_228, %c4_229] : memref<2x16x32xf32, #tpu.memory_space<vmem>>, vector<1x16x1xf32>
    %404 = vector.shape_cast %403 : vector<1x16x1xf32> to vector<16x1xf32>
    %cst_230 = arith.constant 9.99999997E-7 : f32
    %405 = vector.broadcast %cst_230 : f32 to vector<16x1xf32>
    %406 = arith.subf %404, %405 : vector<16x1xf32>
    %407 = vector.broadcast %402 : vector<1x128xf32> to vector<16x128xf32>
    %408 = vector.broadcast %406 : vector<16x1xf32> to vector<16x128xf32>
    %409 = arith.subf %407, %408 : vector<16x128xf32>
    %410 = math.absf %409 : vector<16x128xf32>
    %411 = arith.addf %400, %410 : vector<16x128xf32>
    %c1_231 = arith.constant 1 : index
    %c5_232 = arith.constant 5 : index
    %c0_233 = arith.constant 0 : index
    %412 = vector.load %arg3[%c1_231, %c5_232, %c0_233] : memref<2x32x128xf32, #tpu.memory_space<vmem>>, vector<1x1x128xf32>
    %413 = vector.shape_cast %412 : vector<1x1x128xf32> to vector<1x128xf32>
    %c1_234 = arith.constant 1 : index
    %c0_235 = arith.constant 0 : index
    %c5_236 = arith.constant 5 : index
    %414 = vector.load %arg4[%c1_234, %c0_235, %c5_236] : memref<2x16x32xf32, #tpu.memory_space<vmem>>, vector<1x16x1xf32>
    %415 = vector.shape_cast %414 : vector<1x16x1xf32> to vector<16x1xf32>
    %cst_237 = arith.constant 9.99999997E-7 : f32
    %416 = vector.broadcast %cst_237 : f32 to vector<16x1xf32>
    %417 = arith.subf %415, %416 : vector<16x1xf32>
    %418 = vector.broadcast %413 : vector<1x128xf32> to vector<16x128xf32>
    %419 = vector.broadcast %417 : vector<16x1xf32> to vector<16x128xf32>
    %420 = arith.subf %418, %419 : vector<16x128xf32>
    %421 = math.absf %420 : vector<16x128xf32>
    %422 = arith.addf %411, %421 : vector<16x128xf32>
    %c1_238 = arith.constant 1 : index
    %c6_239 = arith.constant 6 : index
    %c0_240 = arith.constant 0 : index
    %423 = vector.load %arg3[%c1_238, %c6_239, %c0_240] : memref<2x32x128xf32, #tpu.memory_space<vmem>>, vector<1x1x128xf32>
    %424 = vector.shape_cast %423 : vector<1x1x128xf32> to vector<1x128xf32>
    %c1_241 = arith.constant 1 : index
    %c0_242 = arith.constant 0 : index
    %c6_243 = arith.constant 6 : index
    %425 = vector.load %arg4[%c1_241, %c0_242, %c6_243] : memref<2x16x32xf32, #tpu.memory_space<vmem>>, vector<1x16x1xf32>
    %426 = vector.shape_cast %425 : vector<1x16x1xf32> to vector<16x1xf32>
    %cst_244 = arith.constant 9.99999997E-7 : f32
    %427 = vector.broadcast %cst_244 : f32 to vector<16x1xf32>
    %428 = arith.subf %426, %427 : vector<16x1xf32>
    %429 = vector.broadcast %424 : vector<1x128xf32> to vector<16x128xf32>
    %430 = vector.broadcast %428 : vector<16x1xf32> to vector<16x128xf32>
    %431 = arith.subf %429, %430 : vector<16x128xf32>
    %432 = math.absf %431 : vector<16x128xf32>
    %433 = arith.addf %422, %432 : vector<16x128xf32>
    %c1_245 = arith.constant 1 : index
    %c7_246 = arith.constant 7 : index
    %c0_247 = arith.constant 0 : index
    %434 = vector.load %arg3[%c1_245, %c7_246, %c0_247] : memref<2x32x128xf32, #tpu.memory_space<vmem>>, vector<1x1x128xf32>
    %435 = vector.shape_cast %434 : vector<1x1x128xf32> to vector<1x128xf32>
    %c1_248 = arith.constant 1 : index
    %c0_249 = arith.constant 0 : index
    %c7_250 = arith.constant 7 : index
    %436 = vector.load %arg4[%c1_248, %c0_249, %c7_250] : memref<2x16x32xf32, #tpu.memory_space<vmem>>, vector<1x16x1xf32>
    %437 = vector.shape_cast %436 : vector<1x16x1xf32> to vector<16x1xf32>
    %cst_251 = arith.constant 9.99999997E-7 : f32
    %438 = vector.broadcast %cst_251 : f32 to vector<16x1xf32>
    %439 = arith.subf %437, %438 : vector<16x1xf32>
    %440 = vector.broadcast %435 : vector<1x128xf32> to vector<16x128xf32>
    %441 = vector.broadcast %439 : vector<16x1xf32> to vector<16x128xf32>
    %442 = arith.subf %440, %441 : vector<16x128xf32>
    %443 = math.absf %442 : vector<16x128xf32>
    %444 = arith.addf %433, %443 : vector<16x128xf32>
    %c1_252 = arith.constant 1 : index
    %c8_253 = arith.constant 8 : index
    %c0_254 = arith.constant 0 : index
    %445 = vector.load %arg3[%c1_252, %c8_253, %c0_254] : memref<2x32x128xf32, #tpu.memory_space<vmem>>, vector<1x1x128xf32>
    %446 = vector.shape_cast %445 : vector<1x1x128xf32> to vector<1x128xf32>
    %c1_255 = arith.constant 1 : index
    %c0_256 = arith.constant 0 : index
    %c8_257 = arith.constant 8 : index
    %447 = vector.load %arg4[%c1_255, %c0_256, %c8_257] : memref<2x16x32xf32, #tpu.memory_space<vmem>>, vector<1x16x1xf32>
    %448 = vector.shape_cast %447 : vector<1x16x1xf32> to vector<16x1xf32>
    %cst_258 = arith.constant 9.99999997E-7 : f32
    %449 = vector.broadcast %cst_258 : f32 to vector<16x1xf32>
    %450 = arith.subf %448, %449 : vector<16x1xf32>
    %451 = vector.broadcast %446 : vector<1x128xf32> to vector<16x128xf32>
    %452 = vector.broadcast %450 : vector<16x1xf32> to vector<16x128xf32>
    %453 = arith.subf %451, %452 : vector<16x128xf32>
    %454 = math.absf %453 : vector<16x128xf32>
    %455 = arith.addf %444, %454 : vector<16x128xf32>
    %c1_259 = arith.constant 1 : index
    %c9_260 = arith.constant 9 : index
    %c0_261 = arith.constant 0 : index
    %456 = vector.load %arg3[%c1_259, %c9_260, %c0_261] : memref<2x32x128xf32, #tpu.memory_space<vmem>>, vector<1x1x128xf32>
    %457 = vector.shape_cast %456 : vector<1x1x128xf32> to vector<1x128xf32>
    %c1_262 = arith.constant 1 : index
    %c0_263 = arith.constant 0 : index
    %c9_264 = arith.constant 9 : index
    %458 = vector.load %arg4[%c1_262, %c0_263, %c9_264] : memref<2x16x32xf32, #tpu.memory_space<vmem>>, vector<1x16x1xf32>
    %459 = vector.shape_cast %458 : vector<1x16x1xf32> to vector<16x1xf32>
    %cst_265 = arith.constant 9.99999997E-7 : f32
    %460 = vector.broadcast %cst_265 : f32 to vector<16x1xf32>
    %461 = arith.subf %459, %460 : vector<16x1xf32>
    %462 = vector.broadcast %457 : vector<1x128xf32> to vector<16x128xf32>
    %463 = vector.broadcast %461 : vector<16x1xf32> to vector<16x128xf32>
    %464 = arith.subf %462, %463 : vector<16x128xf32>
    %465 = math.absf %464 : vector<16x128xf32>
    %466 = arith.addf %455, %465 : vector<16x128xf32>
    %c1_266 = arith.constant 1 : index
    %c10_267 = arith.constant 10 : index
    %c0_268 = arith.constant 0 : index
    %467 = vector.load %arg3[%c1_266, %c10_267, %c0_268] : memref<2x32x128xf32, #tpu.memory_space<vmem>>, vector<1x1x128xf32>
    %468 = vector.shape_cast %467 : vector<1x1x128xf32> to vector<1x128xf32>
    %c1_269 = arith.constant 1 : index
    %c0_270 = arith.constant 0 : index
    %c10_271 = arith.constant 10 : index
    %469 = vector.load %arg4[%c1_269, %c0_270, %c10_271] : memref<2x16x32xf32, #tpu.memory_space<vmem>>, vector<1x16x1xf32>
    %470 = vector.shape_cast %469 : vector<1x16x1xf32> to vector<16x1xf32>
    %cst_272 = arith.constant 9.99999997E-7 : f32
    %471 = vector.broadcast %cst_272 : f32 to vector<16x1xf32>
    %472 = arith.subf %470, %471 : vector<16x1xf32>
    %473 = vector.broadcast %468 : vector<1x128xf32> to vector<16x128xf32>
    %474 = vector.broadcast %472 : vector<16x1xf32> to vector<16x128xf32>
    %475 = arith.subf %473, %474 : vector<16x128xf32>
    %476 = math.absf %475 : vector<16x128xf32>
    %477 = arith.addf %466, %476 : vector<16x128xf32>
    %c1_273 = arith.constant 1 : index
    %c11_274 = arith.constant 11 : index
    %c0_275 = arith.constant 0 : index
    %478 = vector.load %arg3[%c1_273, %c11_274, %c0_275] : memref<2x32x128xf32, #tpu.memory_space<vmem>>, vector<1x1x128xf32>
    %479 = vector.shape_cast %478 : vector<1x1x128xf32> to vector<1x128xf32>
    %c1_276 = arith.constant 1 : index
    %c0_277 = arith.constant 0 : index
    %c11_278 = arith.constant 11 : index
    %480 = vector.load %arg4[%c1_276, %c0_277, %c11_278] : memref<2x16x32xf32, #tpu.memory_space<vmem>>, vector<1x16x1xf32>
    %481 = vector.shape_cast %480 : vector<1x16x1xf32> to vector<16x1xf32>
    %cst_279 = arith.constant 9.99999997E-7 : f32
    %482 = vector.broadcast %cst_279 : f32 to vector<16x1xf32>
    %483 = arith.subf %481, %482 : vector<16x1xf32>
    %484 = vector.broadcast %479 : vector<1x128xf32> to vector<16x128xf32>
    %485 = vector.broadcast %483 : vector<16x1xf32> to vector<16x128xf32>
    %486 = arith.subf %484, %485 : vector<16x128xf32>
    %487 = math.absf %486 : vector<16x128xf32>
    %488 = arith.addf %477, %487 : vector<16x128xf32>
    %c1_280 = arith.constant 1 : index
    %c12_281 = arith.constant 12 : index
    %c0_282 = arith.constant 0 : index
    %489 = vector.load %arg3[%c1_280, %c12_281, %c0_282] : memref<2x32x128xf32, #tpu.memory_space<vmem>>, vector<1x1x128xf32>
    %490 = vector.shape_cast %489 : vector<1x1x128xf32> to vector<1x128xf32>
    %c1_283 = arith.constant 1 : index
    %c0_284 = arith.constant 0 : index
    %c12_285 = arith.constant 12 : index
    %491 = vector.load %arg4[%c1_283, %c0_284, %c12_285] : memref<2x16x32xf32, #tpu.memory_space<vmem>>, vector<1x16x1xf32>
    %492 = vector.shape_cast %491 : vector<1x16x1xf32> to vector<16x1xf32>
    %cst_286 = arith.constant 9.99999997E-7 : f32
    %493 = vector.broadcast %cst_286 : f32 to vector<16x1xf32>
    %494 = arith.subf %492, %493 : vector<16x1xf32>
    %495 = vector.broadcast %490 : vector<1x128xf32> to vector<16x128xf32>
    %496 = vector.broadcast %494 : vector<16x1xf32> to vector<16x128xf32>
    %497 = arith.subf %495, %496 : vector<16x128xf32>
    %498 = math.absf %497 : vector<16x128xf32>
    %499 = arith.addf %488, %498 : vector<16x128xf32>
    %c1_287 = arith.constant 1 : index
    %c13_288 = arith.constant 13 : index
    %c0_289 = arith.constant 0 : index
    %500 = vector.load %arg3[%c1_287, %c13_288, %c0_289] : memref<2x32x128xf32, #tpu.memory_space<vmem>>, vector<1x1x128xf32>
    %501 = vector.shape_cast %500 : vector<1x1x128xf32> to vector<1x128xf32>
    %c1_290 = arith.constant 1 : index
    %c0_291 = arith.constant 0 : index
    %c13_292 = arith.constant 13 : index
    %502 = vector.load %arg4[%c1_290, %c0_291, %c13_292] : memref<2x16x32xf32, #tpu.memory_space<vmem>>, vector<1x16x1xf32>
    %503 = vector.shape_cast %502 : vector<1x16x1xf32> to vector<16x1xf32>
    %cst_293 = arith.constant 9.99999997E-7 : f32
    %504 = vector.broadcast %cst_293 : f32 to vector<16x1xf32>
    %505 = arith.subf %503, %504 : vector<16x1xf32>
    %506 = vector.broadcast %501 : vector<1x128xf32> to vector<16x128xf32>
    %507 = vector.broadcast %505 : vector<16x1xf32> to vector<16x128xf32>
    %508 = arith.subf %506, %507 : vector<16x128xf32>
    %509 = math.absf %508 : vector<16x128xf32>
    %510 = arith.addf %499, %509 : vector<16x128xf32>
    %c1_294 = arith.constant 1 : index
    %c14_295 = arith.constant 14 : index
    %c0_296 = arith.constant 0 : index
    %511 = vector.load %arg3[%c1_294, %c14_295, %c0_296] : memref<2x32x128xf32, #tpu.memory_space<vmem>>, vector<1x1x128xf32>
    %512 = vector.shape_cast %511 : vector<1x1x128xf32> to vector<1x128xf32>
    %c1_297 = arith.constant 1 : index
    %c0_298 = arith.constant 0 : index
    %c14_299 = arith.constant 14 : index
    %513 = vector.load %arg4[%c1_297, %c0_298, %c14_299] : memref<2x16x32xf32, #tpu.memory_space<vmem>>, vector<1x16x1xf32>
    %514 = vector.shape_cast %513 : vector<1x16x1xf32> to vector<16x1xf32>
    %cst_300 = arith.constant 9.99999997E-7 : f32
    %515 = vector.broadcast %cst_300 : f32 to vector<16x1xf32>
    %516 = arith.subf %514, %515 : vector<16x1xf32>
    %517 = vector.broadcast %512 : vector<1x128xf32> to vector<16x128xf32>
    %518 = vector.broadcast %516 : vector<16x1xf32> to vector<16x128xf32>
    %519 = arith.subf %517, %518 : vector<16x128xf32>
    %520 = math.absf %519 : vector<16x128xf32>
    %521 = arith.addf %510, %520 : vector<16x128xf32>
    %c1_301 = arith.constant 1 : index
    %c15_302 = arith.constant 15 : index
    %c0_303 = arith.constant 0 : index
    %522 = vector.load %arg3[%c1_301, %c15_302, %c0_303] : memref<2x32x128xf32, #tpu.memory_space<vmem>>, vector<1x1x128xf32>
    %523 = vector.shape_cast %522 : vector<1x1x128xf32> to vector<1x128xf32>
    %c1_304 = arith.constant 1 : index
    %c0_305 = arith.constant 0 : index
    %c15_306 = arith.constant 15 : index
    %524 = vector.load %arg4[%c1_304, %c0_305, %c15_306] : memref<2x16x32xf32, #tpu.memory_space<vmem>>, vector<1x16x1xf32>
    %525 = vector.shape_cast %524 : vector<1x16x1xf32> to vector<16x1xf32>
    %cst_307 = arith.constant 9.99999997E-7 : f32
    %526 = vector.broadcast %cst_307 : f32 to vector<16x1xf32>
    %527 = arith.subf %525, %526 : vector<16x1xf32>
    %528 = vector.broadcast %523 : vector<1x128xf32> to vector<16x128xf32>
    %529 = vector.broadcast %527 : vector<16x1xf32> to vector<16x128xf32>
    %530 = arith.subf %528, %529 : vector<16x128xf32>
    %531 = math.absf %530 : vector<16x128xf32>
    %532 = arith.addf %521, %531 : vector<16x128xf32>
    %c1_308 = arith.constant 1 : index
    %c16_309 = arith.constant 16 : index
    %c0_310 = arith.constant 0 : index
    %533 = vector.load %arg3[%c1_308, %c16_309, %c0_310] : memref<2x32x128xf32, #tpu.memory_space<vmem>>, vector<1x1x128xf32>
    %534 = vector.shape_cast %533 : vector<1x1x128xf32> to vector<1x128xf32>
    %c1_311 = arith.constant 1 : index
    %c0_312 = arith.constant 0 : index
    %c16_313 = arith.constant 16 : index
    %535 = vector.load %arg4[%c1_311, %c0_312, %c16_313] : memref<2x16x32xf32, #tpu.memory_space<vmem>>, vector<1x16x1xf32>
    %536 = vector.shape_cast %535 : vector<1x16x1xf32> to vector<16x1xf32>
    %cst_314 = arith.constant 9.99999997E-7 : f32
    %537 = vector.broadcast %cst_314 : f32 to vector<16x1xf32>
    %538 = arith.subf %536, %537 : vector<16x1xf32>
    %539 = vector.broadcast %534 : vector<1x128xf32> to vector<16x128xf32>
    %540 = vector.broadcast %538 : vector<16x1xf32> to vector<16x128xf32>
    %541 = arith.subf %539, %540 : vector<16x128xf32>
    %542 = math.absf %541 : vector<16x128xf32>
    %543 = arith.addf %532, %542 : vector<16x128xf32>
    %c1_315 = arith.constant 1 : index
    %c17_316 = arith.constant 17 : index
    %c0_317 = arith.constant 0 : index
    %544 = vector.load %arg3[%c1_315, %c17_316, %c0_317] : memref<2x32x128xf32, #tpu.memory_space<vmem>>, vector<1x1x128xf32>
    %545 = vector.shape_cast %544 : vector<1x1x128xf32> to vector<1x128xf32>
    %c1_318 = arith.constant 1 : index
    %c0_319 = arith.constant 0 : index
    %c17_320 = arith.constant 17 : index
    %546 = vector.load %arg4[%c1_318, %c0_319, %c17_320] : memref<2x16x32xf32, #tpu.memory_space<vmem>>, vector<1x16x1xf32>
    %547 = vector.shape_cast %546 : vector<1x16x1xf32> to vector<16x1xf32>
    %cst_321 = arith.constant 9.99999997E-7 : f32
    %548 = vector.broadcast %cst_321 : f32 to vector<16x1xf32>
    %549 = arith.subf %547, %548 : vector<16x1xf32>
    %550 = vector.broadcast %545 : vector<1x128xf32> to vector<16x128xf32>
    %551 = vector.broadcast %549 : vector<16x1xf32> to vector<16x128xf32>
    %552 = arith.subf %550, %551 : vector<16x128xf32>
    %553 = math.absf %552 : vector<16x128xf32>
    %554 = arith.addf %543, %553 : vector<16x128xf32>
    %c1_322 = arith.constant 1 : index
    %c18_323 = arith.constant 18 : index
    %c0_324 = arith.constant 0 : index
    %555 = vector.load %arg3[%c1_322, %c18_323, %c0_324] : memref<2x32x128xf32, #tpu.memory_space<vmem>>, vector<1x1x128xf32>
    %556 = vector.shape_cast %555 : vector<1x1x128xf32> to vector<1x128xf32>
    %c1_325 = arith.constant 1 : index
    %c0_326 = arith.constant 0 : index
    %c18_327 = arith.constant 18 : index
    %557 = vector.load %arg4[%c1_325, %c0_326, %c18_327] : memref<2x16x32xf32, #tpu.memory_space<vmem>>, vector<1x16x1xf32>
    %558 = vector.shape_cast %557 : vector<1x16x1xf32> to vector<16x1xf32>
    %cst_328 = arith.constant 9.99999997E-7 : f32
    %559 = vector.broadcast %cst_328 : f32 to vector<16x1xf32>
    %560 = arith.subf %558, %559 : vector<16x1xf32>
    %561 = vector.broadcast %556 : vector<1x128xf32> to vector<16x128xf32>
    %562 = vector.broadcast %560 : vector<16x1xf32> to vector<16x128xf32>
    %563 = arith.subf %561, %562 : vector<16x128xf32>
    %564 = math.absf %563 : vector<16x128xf32>
    %565 = arith.addf %554, %564 : vector<16x128xf32>
    %c1_329 = arith.constant 1 : index
    %c19_330 = arith.constant 19 : index
    %c0_331 = arith.constant 0 : index
    %566 = vector.load %arg3[%c1_329, %c19_330, %c0_331] : memref<2x32x128xf32, #tpu.memory_space<vmem>>, vector<1x1x128xf32>
    %567 = vector.shape_cast %566 : vector<1x1x128xf32> to vector<1x128xf32>
    %c1_332 = arith.constant 1 : index
    %c0_333 = arith.constant 0 : index
    %c19_334 = arith.constant 19 : index
    %568 = vector.load %arg4[%c1_332, %c0_333, %c19_334] : memref<2x16x32xf32, #tpu.memory_space<vmem>>, vector<1x16x1xf32>
    %569 = vector.shape_cast %568 : vector<1x16x1xf32> to vector<16x1xf32>
    %cst_335 = arith.constant 9.99999997E-7 : f32
    %570 = vector.broadcast %cst_335 : f32 to vector<16x1xf32>
    %571 = arith.subf %569, %570 : vector<16x1xf32>
    %572 = vector.broadcast %567 : vector<1x128xf32> to vector<16x128xf32>
    %573 = vector.broadcast %571 : vector<16x1xf32> to vector<16x128xf32>
    %574 = arith.subf %572, %573 : vector<16x128xf32>
    %575 = math.absf %574 : vector<16x128xf32>
    %576 = arith.addf %565, %575 : vector<16x128xf32>
    %c1_336 = arith.constant 1 : index
    %c20_337 = arith.constant 20 : index
    %c0_338 = arith.constant 0 : index
    %577 = vector.load %arg3[%c1_336, %c20_337, %c0_338] : memref<2x32x128xf32, #tpu.memory_space<vmem>>, vector<1x1x128xf32>
    %578 = vector.shape_cast %577 : vector<1x1x128xf32> to vector<1x128xf32>
    %c1_339 = arith.constant 1 : index
    %c0_340 = arith.constant 0 : index
    %c20_341 = arith.constant 20 : index
    %579 = vector.load %arg4[%c1_339, %c0_340, %c20_341] : memref<2x16x32xf32, #tpu.memory_space<vmem>>, vector<1x16x1xf32>
    %580 = vector.shape_cast %579 : vector<1x16x1xf32> to vector<16x1xf32>
    %cst_342 = arith.constant 9.99999997E-7 : f32
    %581 = vector.broadcast %cst_342 : f32 to vector<16x1xf32>
    %582 = arith.subf %580, %581 : vector<16x1xf32>
    %583 = vector.broadcast %578 : vector<1x128xf32> to vector<16x128xf32>
    %584 = vector.broadcast %582 : vector<16x1xf32> to vector<16x128xf32>
    %585 = arith.subf %583, %584 : vector<16x128xf32>
    %586 = math.absf %585 : vector<16x128xf32>
    %587 = arith.addf %576, %586 : vector<16x128xf32>
    %c1_343 = arith.constant 1 : index
    %c21_344 = arith.constant 21 : index
    %c0_345 = arith.constant 0 : index
    %588 = vector.load %arg3[%c1_343, %c21_344, %c0_345] : memref<2x32x128xf32, #tpu.memory_space<vmem>>, vector<1x1x128xf32>
    %589 = vector.shape_cast %588 : vector<1x1x128xf32> to vector<1x128xf32>
    %c1_346 = arith.constant 1 : index
    %c0_347 = arith.constant 0 : index
    %c21_348 = arith.constant 21 : index
    %590 = vector.load %arg4[%c1_346, %c0_347, %c21_348] : memref<2x16x32xf32, #tpu.memory_space<vmem>>, vector<1x16x1xf32>
    %591 = vector.shape_cast %590 : vector<1x16x1xf32> to vector<16x1xf32>
    %cst_349 = arith.constant 9.99999997E-7 : f32
    %592 = vector.broadcast %cst_349 : f32 to vector<16x1xf32>
    %593 = arith.subf %591, %592 : vector<16x1xf32>
    %594 = vector.broadcast %589 : vector<1x128xf32> to vector<16x128xf32>
    %595 = vector.broadcast %593 : vector<16x1xf32> to vector<16x128xf32>
    %596 = arith.subf %594, %595 : vector<16x128xf32>
    %597 = math.absf %596 : vector<16x128xf32>
    %598 = arith.addf %587, %597 : vector<16x128xf32>
    %c1_350 = arith.constant 1 : index
    %c22_351 = arith.constant 22 : index
    %c0_352 = arith.constant 0 : index
    %599 = vector.load %arg3[%c1_350, %c22_351, %c0_352] : memref<2x32x128xf32, #tpu.memory_space<vmem>>, vector<1x1x128xf32>
    %600 = vector.shape_cast %599 : vector<1x1x128xf32> to vector<1x128xf32>
    %c1_353 = arith.constant 1 : index
    %c0_354 = arith.constant 0 : index
    %c22_355 = arith.constant 22 : index
    %601 = vector.load %arg4[%c1_353, %c0_354, %c22_355] : memref<2x16x32xf32, #tpu.memory_space<vmem>>, vector<1x16x1xf32>
    %602 = vector.shape_cast %601 : vector<1x16x1xf32> to vector<16x1xf32>
    %cst_356 = arith.constant 9.99999997E-7 : f32
    %603 = vector.broadcast %cst_356 : f32 to vector<16x1xf32>
    %604 = arith.subf %602, %603 : vector<16x1xf32>
    %605 = vector.broadcast %600 : vector<1x128xf32> to vector<16x128xf32>
    %606 = vector.broadcast %604 : vector<16x1xf32> to vector<16x128xf32>
    %607 = arith.subf %605, %606 : vector<16x128xf32>
    %608 = math.absf %607 : vector<16x128xf32>
    %609 = arith.addf %598, %608 : vector<16x128xf32>
    %c1_357 = arith.constant 1 : index
    %c23_358 = arith.constant 23 : index
    %c0_359 = arith.constant 0 : index
    %610 = vector.load %arg3[%c1_357, %c23_358, %c0_359] : memref<2x32x128xf32, #tpu.memory_space<vmem>>, vector<1x1x128xf32>
    %611 = vector.shape_cast %610 : vector<1x1x128xf32> to vector<1x128xf32>
    %c1_360 = arith.constant 1 : index
    %c0_361 = arith.constant 0 : index
    %c23_362 = arith.constant 23 : index
    %612 = vector.load %arg4[%c1_360, %c0_361, %c23_362] : memref<2x16x32xf32, #tpu.memory_space<vmem>>, vector<1x16x1xf32>
    %613 = vector.shape_cast %612 : vector<1x16x1xf32> to vector<16x1xf32>
    %cst_363 = arith.constant 9.99999997E-7 : f32
    %614 = vector.broadcast %cst_363 : f32 to vector<16x1xf32>
    %615 = arith.subf %613, %614 : vector<16x1xf32>
    %616 = vector.broadcast %611 : vector<1x128xf32> to vector<16x128xf32>
    %617 = vector.broadcast %615 : vector<16x1xf32> to vector<16x128xf32>
    %618 = arith.subf %616, %617 : vector<16x128xf32>
    %619 = math.absf %618 : vector<16x128xf32>
    %620 = arith.addf %609, %619 : vector<16x128xf32>
    %c1_364 = arith.constant 1 : index
    %c24_365 = arith.constant 24 : index
    %c0_366 = arith.constant 0 : index
    %621 = vector.load %arg3[%c1_364, %c24_365, %c0_366] : memref<2x32x128xf32, #tpu.memory_space<vmem>>, vector<1x1x128xf32>
    %622 = vector.shape_cast %621 : vector<1x1x128xf32> to vector<1x128xf32>
    %c1_367 = arith.constant 1 : index
    %c0_368 = arith.constant 0 : index
    %c24_369 = arith.constant 24 : index
    %623 = vector.load %arg4[%c1_367, %c0_368, %c24_369] : memref<2x16x32xf32, #tpu.memory_space<vmem>>, vector<1x16x1xf32>
    %624 = vector.shape_cast %623 : vector<1x16x1xf32> to vector<16x1xf32>
    %cst_370 = arith.constant 9.99999997E-7 : f32
    %625 = vector.broadcast %cst_370 : f32 to vector<16x1xf32>
    %626 = arith.subf %624, %625 : vector<16x1xf32>
    %627 = vector.broadcast %622 : vector<1x128xf32> to vector<16x128xf32>
    %628 = vector.broadcast %626 : vector<16x1xf32> to vector<16x128xf32>
    %629 = arith.subf %627, %628 : vector<16x128xf32>
    %630 = math.absf %629 : vector<16x128xf32>
    %631 = arith.addf %620, %630 : vector<16x128xf32>
    %c1_371 = arith.constant 1 : index
    %c25_372 = arith.constant 25 : index
    %c0_373 = arith.constant 0 : index
    %632 = vector.load %arg3[%c1_371, %c25_372, %c0_373] : memref<2x32x128xf32, #tpu.memory_space<vmem>>, vector<1x1x128xf32>
    %633 = vector.shape_cast %632 : vector<1x1x128xf32> to vector<1x128xf32>
    %c1_374 = arith.constant 1 : index
    %c0_375 = arith.constant 0 : index
    %c25_376 = arith.constant 25 : index
    %634 = vector.load %arg4[%c1_374, %c0_375, %c25_376] : memref<2x16x32xf32, #tpu.memory_space<vmem>>, vector<1x16x1xf32>
    %635 = vector.shape_cast %634 : vector<1x16x1xf32> to vector<16x1xf32>
    %cst_377 = arith.constant 9.99999997E-7 : f32
    %636 = vector.broadcast %cst_377 : f32 to vector<16x1xf32>
    %637 = arith.subf %635, %636 : vector<16x1xf32>
    %638 = vector.broadcast %633 : vector<1x128xf32> to vector<16x128xf32>
    %639 = vector.broadcast %637 : vector<16x1xf32> to vector<16x128xf32>
    %640 = arith.subf %638, %639 : vector<16x128xf32>
    %641 = math.absf %640 : vector<16x128xf32>
    %642 = arith.addf %631, %641 : vector<16x128xf32>
    %c1_378 = arith.constant 1 : index
    %c26_379 = arith.constant 26 : index
    %c0_380 = arith.constant 0 : index
    %643 = vector.load %arg3[%c1_378, %c26_379, %c0_380] : memref<2x32x128xf32, #tpu.memory_space<vmem>>, vector<1x1x128xf32>
    %644 = vector.shape_cast %643 : vector<1x1x128xf32> to vector<1x128xf32>
    %c1_381 = arith.constant 1 : index
    %c0_382 = arith.constant 0 : index
    %c26_383 = arith.constant 26 : index
    %645 = vector.load %arg4[%c1_381, %c0_382, %c26_383] : memref<2x16x32xf32, #tpu.memory_space<vmem>>, vector<1x16x1xf32>
    %646 = vector.shape_cast %645 : vector<1x16x1xf32> to vector<16x1xf32>
    %cst_384 = arith.constant 9.99999997E-7 : f32
    %647 = vector.broadcast %cst_384 : f32 to vector<16x1xf32>
    %648 = arith.subf %646, %647 : vector<16x1xf32>
    %649 = vector.broadcast %644 : vector<1x128xf32> to vector<16x128xf32>
    %650 = vector.broadcast %648 : vector<16x1xf32> to vector<16x128xf32>
    %651 = arith.subf %649, %650 : vector<16x128xf32>
    %652 = math.absf %651 : vector<16x128xf32>
    %653 = arith.addf %642, %652 : vector<16x128xf32>
    %c1_385 = arith.constant 1 : index
    %c27_386 = arith.constant 27 : index
    %c0_387 = arith.constant 0 : index
    %654 = vector.load %arg3[%c1_385, %c27_386, %c0_387] : memref<2x32x128xf32, #tpu.memory_space<vmem>>, vector<1x1x128xf32>
    %655 = vector.shape_cast %654 : vector<1x1x128xf32> to vector<1x128xf32>
    %c1_388 = arith.constant 1 : index
    %c0_389 = arith.constant 0 : index
    %c27_390 = arith.constant 27 : index
    %656 = vector.load %arg4[%c1_388, %c0_389, %c27_390] : memref<2x16x32xf32, #tpu.memory_space<vmem>>, vector<1x16x1xf32>
    %657 = vector.shape_cast %656 : vector<1x16x1xf32> to vector<16x1xf32>
    %cst_391 = arith.constant 9.99999997E-7 : f32
    %658 = vector.broadcast %cst_391 : f32 to vector<16x1xf32>
    %659 = arith.subf %657, %658 : vector<16x1xf32>
    %660 = vector.broadcast %655 : vector<1x128xf32> to vector<16x128xf32>
    %661 = vector.broadcast %659 : vector<16x1xf32> to vector<16x128xf32>
    %662 = arith.subf %660, %661 : vector<16x128xf32>
    %663 = math.absf %662 : vector<16x128xf32>
    %664 = arith.addf %653, %663 : vector<16x128xf32>
    %c1_392 = arith.constant 1 : index
    %c28_393 = arith.constant 28 : index
    %c0_394 = arith.constant 0 : index
    %665 = vector.load %arg3[%c1_392, %c28_393, %c0_394] : memref<2x32x128xf32, #tpu.memory_space<vmem>>, vector<1x1x128xf32>
    %666 = vector.shape_cast %665 : vector<1x1x128xf32> to vector<1x128xf32>
    %c1_395 = arith.constant 1 : index
    %c0_396 = arith.constant 0 : index
    %c28_397 = arith.constant 28 : index
    %667 = vector.load %arg4[%c1_395, %c0_396, %c28_397] : memref<2x16x32xf32, #tpu.memory_space<vmem>>, vector<1x16x1xf32>
    %668 = vector.shape_cast %667 : vector<1x16x1xf32> to vector<16x1xf32>
    %cst_398 = arith.constant 9.99999997E-7 : f32
    %669 = vector.broadcast %cst_398 : f32 to vector<16x1xf32>
    %670 = arith.subf %668, %669 : vector<16x1xf32>
    %671 = vector.broadcast %666 : vector<1x128xf32> to vector<16x128xf32>
    %672 = vector.broadcast %670 : vector<16x1xf32> to vector<16x128xf32>
    %673 = arith.subf %671, %672 : vector<16x128xf32>
    %674 = math.absf %673 : vector<16x128xf32>
    %675 = arith.addf %664, %674 : vector<16x128xf32>
    %c1_399 = arith.constant 1 : index
    %c29_400 = arith.constant 29 : index
    %c0_401 = arith.constant 0 : index
    %676 = vector.load %arg3[%c1_399, %c29_400, %c0_401] : memref<2x32x128xf32, #tpu.memory_space<vmem>>, vector<1x1x128xf32>
    %677 = vector.shape_cast %676 : vector<1x1x128xf32> to vector<1x128xf32>
    %c1_402 = arith.constant 1 : index
    %c0_403 = arith.constant 0 : index
    %c29_404 = arith.constant 29 : index
    %678 = vector.load %arg4[%c1_402, %c0_403, %c29_404] : memref<2x16x32xf32, #tpu.memory_space<vmem>>, vector<1x16x1xf32>
    %679 = vector.shape_cast %678 : vector<1x16x1xf32> to vector<16x1xf32>
    %cst_405 = arith.constant 9.99999997E-7 : f32
    %680 = vector.broadcast %cst_405 : f32 to vector<16x1xf32>
    %681 = arith.subf %679, %680 : vector<16x1xf32>
    %682 = vector.broadcast %677 : vector<1x128xf32> to vector<16x128xf32>
    %683 = vector.broadcast %681 : vector<16x1xf32> to vector<16x128xf32>
    %684 = arith.subf %682, %683 : vector<16x128xf32>
    %685 = math.absf %684 : vector<16x128xf32>
    %686 = arith.addf %675, %685 : vector<16x128xf32>
    %c1_406 = arith.constant 1 : index
    %c30_407 = arith.constant 30 : index
    %c0_408 = arith.constant 0 : index
    %687 = vector.load %arg3[%c1_406, %c30_407, %c0_408] : memref<2x32x128xf32, #tpu.memory_space<vmem>>, vector<1x1x128xf32>
    %688 = vector.shape_cast %687 : vector<1x1x128xf32> to vector<1x128xf32>
    %c1_409 = arith.constant 1 : index
    %c0_410 = arith.constant 0 : index
    %c30_411 = arith.constant 30 : index
    %689 = vector.load %arg4[%c1_409, %c0_410, %c30_411] : memref<2x16x32xf32, #tpu.memory_space<vmem>>, vector<1x16x1xf32>
    %690 = vector.shape_cast %689 : vector<1x16x1xf32> to vector<16x1xf32>
    %cst_412 = arith.constant 9.99999997E-7 : f32
    %691 = vector.broadcast %cst_412 : f32 to vector<16x1xf32>
    %692 = arith.subf %690, %691 : vector<16x1xf32>
    %693 = vector.broadcast %688 : vector<1x128xf32> to vector<16x128xf32>
    %694 = vector.broadcast %692 : vector<16x1xf32> to vector<16x128xf32>
    %695 = arith.subf %693, %694 : vector<16x128xf32>
    %696 = math.absf %695 : vector<16x128xf32>
    %697 = arith.addf %686, %696 : vector<16x128xf32>
    %c1_413 = arith.constant 1 : index
    %c31_414 = arith.constant 31 : index
    %c0_415 = arith.constant 0 : index
    %698 = vector.load %arg3[%c1_413, %c31_414, %c0_415] : memref<2x32x128xf32, #tpu.memory_space<vmem>>, vector<1x1x128xf32>
    %699 = vector.shape_cast %698 : vector<1x1x128xf32> to vector<1x128xf32>
    %c1_416 = arith.constant 1 : index
    %c0_417 = arith.constant 0 : index
    %c31_418 = arith.constant 31 : index
    %700 = vector.load %arg4[%c1_416, %c0_417, %c31_418] : memref<2x16x32xf32, #tpu.memory_space<vmem>>, vector<1x16x1xf32>
    %701 = vector.shape_cast %700 : vector<1x16x1xf32> to vector<16x1xf32>
    %cst_419 = arith.constant 9.99999997E-7 : f32
    %702 = vector.broadcast %cst_419 : f32 to vector<16x1xf32>
    %703 = arith.subf %701, %702 : vector<16x1xf32>
    %704 = vector.broadcast %699 : vector<1x128xf32> to vector<16x128xf32>
    %705 = vector.broadcast %703 : vector<16x1xf32> to vector<16x128xf32>
    %706 = arith.subf %704, %705 : vector<16x128xf32>
    %707 = math.absf %706 : vector<16x128xf32>
    %708 = arith.addf %697, %707 : vector<16x128xf32>
    %c1_420 = arith.constant 1 : index
    %c0_421 = arith.constant 0 : index
    %c0_422 = arith.constant 0 : index
    %709 = vector.load %arg5[%c1_420, %c0_421, %c0_422] : memref<2x16x128xf32, #tpu.memory_space<vmem>>, vector<1x16x128xf32>
    %710 = vector.shape_cast %709 : vector<1x16x128xf32> to vector<16x128xf32>
    %711 = vector.shape_cast %708 : vector<16x128xf32> to vector<1x16x128xf32>
    tpu.vector_store %arg5[%c1_420, %c0_421, %c0_422], %711 {strides = array<i32>} : memref<2x16x128xf32, #tpu.memory_space<vmem>>, vector<1x16x128xf32>,
    return
  }
  func.func @transform_0(%arg0: i32, %arg1: i32, %arg2: i32) -> (i32, i32, i32) {
    %c0_i32 = arith.constant 0 : i32
    %c0_i32_0 = arith.constant 0 : i32
    return %arg0, %c0_i32, %arg2 : i32, i32, i32
  }
  func.func @transform_1(%arg0: i32, %arg1: i32, %arg2: i32) -> (i32, i32, i32) {
    %c0_i32 = arith.constant 0 : i32
    %c0_i32_0 = arith.constant 0 : i32
    return %arg0, %arg1, %c0_i32 : i32, i32, i32
  }
  func.func @transform_2(%arg0: i32, %arg1: i32, %arg2: i32) -> (i32, i32, i32) {
    %c0_i32 = arith.constant 0 : i32
    return %arg0, %arg1, %arg2 : i32, i32, i32
  }
}

</mosaic_0001>

<bundles_post_ra>
// kernel: tpu_custom_call.1
= control target key start
LH: loop header
LB: loop body
LE: loop exit
PB: predicated region body
PF: predicated region fallthrough
CT: control target
= control target key end

     0   :  { %7 = vsyncpa [#allocation3], 0  ;;  %s2170_s0 = inlined_call_operand.hbm [shape: f32[2,32,128], index: 0, kind: input, shape index: {}]   ;;  %s2171_s1 = inlined_call_operand.hbm [shape: f32[2,16,32], index: 1, kind: input, shape index: {}]   ;;  %s2172_s2 = inlined_call_operand.hbm [shape: f32[2,16,128], index: 2, kind: output, shape index: {}]  }
   0x1   :  { %8 = vsyncpa [#allocation6], 0 }
   0x2   :  { %9 = vsyncpa [#allocation4], 0  ;;  %s1565_s9 = smov [#allocation2]   ;;  %s1493_s13 = scalar_lea.hbm %s2170_s0, 1024 }
   0x3   :  { %s15_s10 = sshll.u32 %s1565_s9, 4  ;;  %p1494_p0 = scmp.ne.s32.totalorder %s2170_s0, %s1493_s13  ;;  %s16_s10 = int_to_ptr.vmem [resolvable:$true] %s15_s10 }
   0x4   :  { %p1497_p1 = scmp.lt.u32.totalorder %s1493_s13, %s2170_s0 }
   0x6   :  { %p1499_p2 = pnand %p1497_p1, %p1494_p0 }
   0x8   :  { %1502 = shalt.err (!%p1499_p2)
}
   0x9   :  { %s1503_s18 = scalar_lea.vmem %s16_s10, 1024  ;;  %p1508_p4 = scmp.lt.s32.totalorder %s16_s10, %s16_s10 }
   0xa   :  { %p1504_p3 = scmp.ne.s32.totalorder %s16_s10, %s1503_s18  ;;  %p1509_p5 = scmp.lt.s32.totalorder %s1503_s18, %s1503_s18 }
   0xc   :  { %p1510_p6 = por %p1509_p5, %p1508_p4 }
   0xe   :  { %p1511_p7 = pnand %p1510_p6, %p1504_p3 }
  0x10   :  { %1514 = shalt.err (!%p1511_p7)
}
  0x11   :  { %s1566_s19 = smov 128   ;;  %s1567_s20 = smov 8  }
  0x12   :  { %21 = dma.hbm_to_vmem [thread:$0]  %s2170_s0, 1024, %s16_s10, [#allocation3], %s1566_s19, %s1566_s19, %s1567_s20  }
  0x13   :  { %s1568_s23 = smov [#allocation5]   ;;  %s1515_s27 = scalar_lea.hbm %s2171_s1, 512 }
  0x14   :  { %s27_s24 = sshll.u32 %s1568_s23, 4  ;;  %p1516_p8 = scmp.ne.s32.totalorder %s2171_s1, %s1515_s27  ;;  %s28_s24 = int_to_ptr.vmem [resolvable:$true] %s27_s24 }
  0x15   :  { %p1519_p9 = scmp.lt.u32.totalorder %s1515_s27, %s2171_s1 }
  0x17   :  { %p1521_p10 = pnand %p1519_p9, %p1516_p8 }
  0x19   :  { %1524 = shalt.err (!%p1521_p10)
}
  0x1a   :  { %s1525_s4 = scalar_lea.vmem %s28_s24, 512  ;;  %p1530_p12 = scmp.lt.s32.totalorder %s28_s24, %s28_s24 }
  0x1b   :  { %p1526_p11 = scmp.ne.s32.totalorder %s28_s24, %s1525_s4  ;;  %p1531_p13 = scmp.lt.s32.totalorder %s1525_s4, %s1525_s4 }
  0x1d   :  { %p1532_p0 = por %p1531_p13, %p1530_p12 }
  0x1f   :  { %p1533_p1 = pnand %p1532_p0, %p1526_p11 }
  0x21   :  { %1536 = shalt.err (!%p1533_p1)
}
  0x22   :  { %33 = dma.hbm_to_vmem [thread:$0]  %s2171_s1, 512, %s28_s24, [#allocation6], %s1566_s19, %s1566_s19, %s1567_s20  }
  0x23   :  { %1559 = dma.done.wait [#allocation3], 1024  }
  0x24   :  { %1560 = vsyncadd [#allocation3], 4294966272 }
  0x25   :  { %1561 = dma.done.wait [#allocation6], 512  }
  0x26   :  { %1562 = vsyncadd [#allocation6], 4294966784  ;;  %v1569_v0 = vmov 2   ;;  %v1570_v1 = vmov 1   ;;  %v41_v2 = vld [vmem:[#allocation5] sm:$0xff]  ;;  %v42_v3 = vld [vmem:[#allocation5 + $0x8] sm:$0xff] }
  0x27   :  { %1399 = vset.pattern.permute.xlu0 %v1569_v0  ;;  %1398 = vset.pattern.permute.xlu1 %v1570_v1  ;;  %v1649_v4 = vadd.f32 -1e-06, %v41_v2  ;;  %v1653_v5 = vadd.f32 -1e-06, %v42_v3  ;;  %v1571_v6 = vmov 5   ;;  %v1572_v7 = vmov 8  }
  0x28   :  { %v1573_v8 = vmov 3   ;;  %v2193_v9 = vmov 11   ;;  %v1575_v10 = vmov 4   ;;  %v2188_v11 = vmov 14   ;;  %v659_v21 = vld [vmem:[#allocation5 + $0x10] sm:$0xff]  ;;  %v660_v24 = vld [vmem:[#allocation5 + $0x18] sm:$0xff] }
  0x29   :  { %90 = vperm.xlu0 %1399, %v1649_v4   ;;  %71 = vperm.xlu1 %1398, %v1649_v4   ;;  %v2184_v12 = vmov 17   ;;  %v2181_v13 = vmov 20   ;;  %v1579_v14 = vmov 6   ;;  %v2176_v15 = vmov 23   ;;  %v1824_v58 = vld [vmem:[#allocation2 + $0x1] ss:$0 sm:$0xff] }
  0x2a   :  { %v1581_v16 = vmov 7   ;;  %v2173_v17 = vmov 26   ;;  %v2178_v18 = vmov 29   ;;  %v1584_v19 = vmov 0   ;;  %v1829_v60 = vld [vmem:[#allocation2 + $0x2] ss:$0 sm:$0xff] }
  0x2b   :  { %v1585_v20 = vmov 9   ;;  %v1695_v22 = vadd.f32 -1e-06, %v659_v21  ;;  %v1586_v23 = vmov 10   ;;  %v1700_v25 = vadd.f32 -1e-06, %v660_v24 }
  0x2c   :  { %v2192_v26 = vmov 12   ;;  %v2191_v27 = vmov 13   ;;  %v2187_v28 = vmov 15   ;;  %v2186_v29 = vmov 16   ;;  %v1833_v61 = vld [vmem:[#allocation2] ss:$0 sm:$0xff] }
  0x2d   :  { %1403 = vset.pattern.permute.xlu0 %v1571_v6  ;;  %75 = vperm.xlu1 %1398, %v1653_v5   ;;  %v2183_v30 = vmov 18   ;;  %v2182_v31 = vmov 19   ;;  %v2180_v32 = vmov 21   ;;  %v2179_v36 = vmov 22   ;;  %v1839_v3 = vld [vmem:[#allocation2 + $0x3] ss:$0 sm:$0xff] }
  0x2e   :  { %147 = vperm.xlu0 %1403, %v1649_v4   ;;  %v2175_v42 = vmov 24   ;;  %v2174_v46 = vmov 25   ;;  %v2177_v52 = vmov 27   ;;  %v2185_v56 = vmov 28   ;;  %v1842_v24 = vld [vmem:[#allocation2 + $0x4] ss:$0 sm:$0xff] }
  0x2f   :  { %s1601_s1 = smov [#allocation7]  }
  0x30   :  { %s1280_s6 = sshll.u32 %s1601_s1, 4  ;;  %s1281_s6 = int_to_ptr.vmem [resolvable:$true] %s1280_s6 }
  0x31   :  { %1400 = vset.pattern.permute.xlu1 %v1569_v0  ;;  %s1537_s7 = scalar_lea.vmem %s1281_s6, 512  ;;  %p1542_p3 = scmp.lt.s32.totalorder %s1281_s6, %s1281_s6 }
  0x32   :  { %1407 = vset.pattern.permute.xlu0 %v1572_v7  ;;  %94 = vperm.xlu1 %1400, %v1653_v5   ;;  %p1538_p2 = scmp.ne.s32.totalorder %s1281_s6, %s1537_s7  ;;  %p1543_p4 = scmp.lt.s32.totalorder %s1537_s7, %s1537_s7 }
  0x33   :  { %204 = vperm.xlu0 %1407, %v1649_v4  }
  0x34   :  { %p1544_p5 = por %p1543_p4, %p1542_p3 }
  0x36   :  { %1401 = vset.pattern.permute.xlu1 %v1573_v8  ;;  %p1545_p6 = pnand %p1544_p5, %p1538_p2 }
  0x37   :  { %1411 = vset.pattern.permute.xlu0 %v2193_v9  ;;  %109 = vperm.xlu1 %1401, %v1649_v4  }
  0x38   :  { %261 = vperm.xlu0 %1411, %v1649_v4  }
  0x3b   :  { %1402 = vset.pattern.permute.xlu1 %v1575_v10 }
  0x3c   :  { %1415 = vset.pattern.permute.xlu0 %v2188_v11  ;;  %128 = vperm.xlu1 %1402, %v1649_v4  }
  0x3d   :  { %318 = vperm.xlu0 %1415, %v1649_v4  }
  0x40   :  { %132 = vperm.xlu1 %1402, %v1653_v5  }
  0x41   :  { %1419 = vset.pattern.permute.xlu0 %v2184_v12 }
  0x42   :  { %375 = vperm.xlu0 %1419, %v1649_v4  }
  0x44   :  { %1404 = vset.pattern.permute.xlu1 %v1571_v6 }
  0x45   :  { %151 = vperm.xlu1 %1404, %v1653_v5  }
  0x46   :  { %1423 = vset.pattern.permute.xlu0 %v2181_v13 }
  0x47   :  { %432 = vperm.xlu0 %1423, %v1649_v4  }
  0x49   :  { %1405 = vset.pattern.permute.xlu1 %v1579_v14 }
  0x4a   :  { %166 = vperm.xlu1 %1405, %v1649_v4  }
  0x4b   :  { %1427 = vset.pattern.permute.xlu0 %v2176_v15 }
  0x4c   :  { %489 = vperm.xlu0 %1427, %v1649_v4  }
  0x4e   :  { %1406 = vset.pattern.permute.xlu1 %v1581_v16 }
  0x4f   :  { %185 = vperm.xlu1 %1406, %v1649_v4  }
  0x50   :  { %1431 = vset.pattern.permute.xlu0 %v2173_v17 }
  0x51   :  { %546 = vperm.xlu0 %1431, %v1649_v4  }
  0x53   :  { %189 = vperm.xlu1 %1406, %v1653_v5  }
  0x55   :  { %1435 = vset.pattern.permute.xlu0 %v2178_v18 }
  0x56   :  { %603 = vperm.xlu0 %1435, %v1649_v4  }
  0x57   :  { %1408 = vset.pattern.permute.xlu1 %v1572_v7 }
  0x58   :  { %208 = vperm.xlu1 %1408, %v1653_v5  }
  0x5a   :  { %1436 = vset.pattern.permute.xlu0 %v1584_v19 }
  0x5b   :  { %51 = vperm.xlu0 %1436, %v1649_v4  }
  0x5c   :  { %1409 = vset.pattern.permute.xlu1 %v1585_v20 }
  0x5d   :  { %223 = vperm.xlu1 %1409, %v1649_v4  }
  0x5f   :  { %56 = vperm.xlu0 %1436, %v1653_v5  }
  0x61   :  { %1410 = vset.pattern.permute.xlu1 %v1586_v23 }
  0x62   :  { %242 = vperm.xlu1 %1410, %v1649_v4  }
  0x63   :  { %669 = vperm.xlu0 %1436, %v1695_v22  }
  0x66   :  { %246 = vperm.xlu1 %1410, %v1653_v5  }
  0x67   :  { %1442 = vset.pattern.permute.xlu0 %v1570_v1 }
  0x68   :  { %693 = vperm.xlu0 %1442, %v1700_v25  }
  0x6a   :  { %1412 = vset.pattern.permute.xlu1 %v2193_v9 }
  0x6b   :  { %265 = vperm.xlu1 %1412, %v1653_v5  }
  0x6c   :  { %1443 = vset.pattern.permute.xlu0 %v1573_v8 }
  0x6d   :  { %113 = vperm.xlu0 %1443, %v1653_v5  }
  0x6f   :  { %1413 = vset.pattern.permute.xlu1 %v2192_v26 }
  0x70   :  { %280 = vperm.xlu1 %1413, %v1649_v4  }
  0x71   :  { %727 = vperm.xlu0 %1443, %v1695_v22  }
  0x74   :  { %1414 = vset.pattern.permute.xlu1 %v2191_v27 }
  0x75   :  { %1447 = vset.pattern.permute.xlu0 %v1575_v10  ;;  %299 = vperm.xlu1 %1414, %v1649_v4  }
  0x76   :  { %750 = vperm.xlu0 %1447, %v1700_v25  }
  0x79   :  { %303 = vperm.xlu1 %1414, %v1653_v5  }
  0x7a   :  { %1448 = vset.pattern.permute.xlu0 %v1579_v14 }
  0x7b   :  { %170 = vperm.xlu0 %1448, %v1653_v5  }
  0x7d   :  { %1416 = vset.pattern.permute.xlu1 %v2188_v11 }
  0x7e   :  { %322 = vperm.xlu1 %1416, %v1653_v5  }
  0x7f   :  { %784 = vperm.xlu0 %1448, %v1695_v22  }
  0x82   :  { %1417 = vset.pattern.permute.xlu1 %v2187_v28 }
  0x83   :  { %1452 = vset.pattern.permute.xlu0 %v1581_v16  ;;  %337 = vperm.xlu1 %1417, %v1649_v4  }
  0x84   :  { %807 = vperm.xlu0 %1452, %v1700_v25  }
  0x87   :  { %1418 = vset.pattern.permute.xlu1 %v2186_v29 }
  0x88   :  { %1453 = vset.pattern.permute.xlu0 %v1585_v20  ;;  %356 = vperm.xlu1 %1418, %v1649_v4  }
  0x89   :  { %227 = vperm.xlu0 %1453, %v1653_v5  }
  0x8c   :  { %360 = vperm.xlu1 %1418, %v1653_v5  }
  0x8d   :  { %841 = vperm.xlu0 %1453, %v1695_v22  }
  0x90   :  { %1420 = vset.pattern.permute.xlu1 %v2184_v12 }
  0x91   :  { %1457 = vset.pattern.permute.xlu0 %v1586_v23  ;;  %379 = vperm.xlu1 %1420, %v1653_v5  }
  0x92   :  { %864 = vperm.xlu0 %1457, %v1700_v25  }
  0x95   :  { %1421 = vset.pattern.permute.xlu1 %v2183_v30 }
  0x96   :  { %1458 = vset.pattern.permute.xlu0 %v2192_v26  ;;  %394 = vperm.xlu1 %1421, %v1649_v4  }
  0x97   :  { %284 = vperm.xlu0 %1458, %v1653_v5  }
  0x9a   :  { %1422 = vset.pattern.permute.xlu1 %v2182_v31 }
  0x9b   :  { %898 = vperm.xlu0 %1458, %v1695_v22   ;;  %413 = vperm.xlu1 %1422, %v1649_v4  }
  0x9f   :  { %1462 = vset.pattern.permute.xlu0 %v2191_v27  ;;  %417 = vperm.xlu1 %1422, %v1653_v5  }
  0xa0   :  { %921 = vperm.xlu0 %1462, %v1700_v25  }
  0xa3   :  { %1424 = vset.pattern.permute.xlu1 %v2181_v13  ;;  %v1862_v13 = vld [vmem:[#allocation2 + $0x7] ss:$0 sm:$0xff] }
  0xa4   :  { %1463 = vset.pattern.permute.xlu0 %v2187_v28  ;;  %436 = vperm.xlu1 %1424, %v1653_v5  }
  0xa5   :  { %341 = vperm.xlu0 %1463, %v1653_v5  }
  0xa8   :  { %1425 = vset.pattern.permute.xlu1 %v2180_v32  ;;  %v1751_v33 = vpop.permute.xlu1 %71  ;;  %v1753_v34 = vpop.permute.xlu0 %90 }
  0xa9   :  { %955 = vperm.xlu0 %1463, %v1695_v22   ;;  %451 = vperm.xlu1 %1425, %v1649_v4   ;;  %v78_v62 = vsub.f32 %v1824_v58, %v1751_v33  ;;  %v97_v63 = vsub.f32 %v1829_v60, %v1753_v34  ;;  %v1850_v34 = vld [vmem:[#allocation2 + $0x5] ss:$0 sm:$0xff] }
  0xac   :  { %v1757_v35 = vpop.permute.xlu1 %75 }
  0xad   :  { %1467 = vset.pattern.permute.xlu0 %v2186_v29  ;;  %1426 = vset.pattern.permute.xlu1 %v2179_v36  ;;  %v1761_v37 = vpop.permute.xlu0 %147 }
  0xae   :  { %978 = vperm.xlu0 %1467, %v1700_v25   ;;  %470 = vperm.xlu1 %1426, %v1649_v4  }
  0xb1   :  { %v1765_v38 = vpop.permute.xlu1 %94 }
  0xb2   :  { %1468 = vset.pattern.permute.xlu0 %v2183_v30  ;;  %474 = vperm.xlu1 %1426, %v1653_v5   ;;  %v1769_v39 = vpop.permute.xlu0 %204 }
  0xb3   :  { %398 = vperm.xlu0 %1468, %v1653_v5  }
  0xb6   :  { %1428 = vset.pattern.permute.xlu1 %v2176_v15  ;;  %v1773_v40 = vpop.permute.xlu1 %109 }
  0xb7   :  { %1012 = vperm.xlu0 %1468, %v1695_v22   ;;  %493 = vperm.xlu1 %1428, %v1653_v5   ;;  %v1777_v41 = vpop.permute.xlu0 %261  ;;  %v116_v33 = vsub.f32 %v1839_v3, %v1773_v40 }
  0xbb   :  { %1472 = vset.pattern.permute.xlu0 %v2182_v31  ;;  %1429 = vset.pattern.permute.xlu1 %v2175_v42  ;;  %v1781_v43 = vpop.permute.xlu1 %128 }
  0xbc   :  { %1035 = vperm.xlu0 %1472, %v1700_v25   ;;  %508 = vperm.xlu1 %1429, %v1649_v4   ;;  %v1785_v44 = vpop.permute.xlu0 %318 }
  0xbf   :  { %v1787_v45 = vpop.permute.xlu1 %132 }
  0xc0   :  { %1473 = vset.pattern.permute.xlu0 %v2180_v32  ;;  %1430 = vset.pattern.permute.xlu1 %v2174_v46  ;;  %v118_v32 = vand.u32 2147483647, %v116_v33 }
  0xc1   :  { %455 = vperm.xlu0 %1473, %v1653_v5   ;;  %527 = vperm.xlu1 %1430, %v1649_v4   ;;  %v1793_v47 = vpop.permute.xlu0 %375 }
  0xc4   :  { %v1795_v48 = vpop.permute.xlu1 %151 }
  0xc5   :  { %1069 = vperm.xlu0 %1473, %v1695_v22   ;;  %531 = vperm.xlu1 %1430, %v1653_v5  }
  0xc6   :  { %v1799_v49 = vpop.permute.xlu0 %432 }
  0xc9   :  { %1477 = vset.pattern.permute.xlu0 %v2179_v36  ;;  %1432 = vset.pattern.permute.xlu1 %v2173_v17  ;;  %v1803_v50 = vpop.permute.xlu1 %166  ;;  %v2189_v36 = vmov 30  }
  0xca   :  { %1092 = vperm.xlu0 %1477, %v1700_v25   ;;  %550 = vperm.xlu1 %1432, %v1653_v5  }
  0xcb   :  { %v1807_v51 = vpop.permute.xlu0 %489 }
  0xce   :  { %1478 = vset.pattern.permute.xlu0 %v2175_v42  ;;  %1433 = vset.pattern.permute.xlu1 %v2177_v52  ;;  %v1811_v53 = vpop.permute.xlu1 %185  ;;  %v99_v42 = vand.u32 2147483647, %v97_v63  ;;  %v1858_v63 = vld [vmem:[#allocation2 + $0x6] ss:$0 sm:$0xff] }
  0xcf   :  { %512 = vperm.xlu0 %1478, %v1653_v5   ;;  %565 = vperm.xlu1 %1433, %v1649_v4   ;;  %v192_v33 = vsub.f32 %v1862_v13, %v1811_v53 }
  0xd0   :  { %v1815_v54 = vpop.permute.xlu0 %546 }
  0xd2   :  { %v1817_v55 = vpop.permute.xlu1 %189 }
  0xd3   :  { %1126 = vperm.xlu0 %1478, %v1695_v22   ;;  %1434 = vset.pattern.permute.xlu1 %v2185_v56 }
  0xd4   :  { %584 = vperm.xlu1 %1434, %v1649_v4  }
  0xd5   :  { %v1822_v57 = vpop.permute.xlu0 %603 }
  0xd7   :  { %1482 = vset.pattern.permute.xlu0 %v2174_v46  ;;  %v1827_v59 = vpop.permute.xlu1 %208  ;;  %v80_v46 = vand.u32 2147483647, %v78_v62 }
  0xd8   :  { %1149 = vperm.xlu0 %1482, %v1700_v25   ;;  %588 = vperm.xlu1 %1434, %v1653_v5  }
  0xda   :  { %v52_v2 = vpop.permute.xlu0 %51 }
  0xdb   :  { %v59_v21 = vsub.f32 %v1833_v61, %v52_v2 }
  0xdc   :  { %1483 = vset.pattern.permute.xlu0 %v2177_v52  ;;  %1437 = vset.pattern.permute.xlu1 %v2178_v18  ;;  %v224_v17 = vpop.permute.xlu1 %223  ;;  %v154_v52 = vsub.f32 %v1850_v34, %v1761_v37  ;;  %v135_v18 = vsub.f32 %v1842_v24, %v1781_v43 }
  0xdd   :  { %v61_v15 = vand.u32 2147483647, %v59_v21  ;;  %569 = vperm.xlu0 %1483, %v1653_v5   ;;  %607 = vperm.xlu1 %1437, %v1653_v5  }
  0xde   :  { %v1852_v2 = vpop.permute.xlu0 %56  ;;  %v156_v37 = vand.u32 2147483647, %v154_v52  ;;  %v137_v30 = vand.u32 2147483647, %v135_v18  ;;  %v2190_v18 = vmov 31  }
  0xdf   :  { %v82_v62 = vadd.f32 %v80_v46, %v61_v15  ;;  %v173_v15 = vsub.f32 %v1858_v63, %v1803_v50 }
  0xe1   :  { %v101_v21 = vadd.f32 %v99_v42, %v82_v62  ;;  %1183 = vperm.xlu0 %1483, %v1695_v22   ;;  %1438 = vset.pattern.permute.xlu1 %v2189_v36  ;;  %v243_v40 = vpop.permute.xlu1 %242  ;;  %v1869_v42 = vld [vmem:[#allocation2 + $0x8] ss:$0 sm:$0xff]  ;;  %v175_v52 = vand.u32 2147483647, %v173_v15 }
  0xe2   :  { %622 = vperm.xlu1 %1438, %v1649_v4   ;;  %v1865_v31 = vpop.permute.xlu0 %669  ;;  %v211_v46 = vsub.f32 %v1869_v42, %v1769_v39 }
  0xe3   :  { %v120_v43 = vadd.f32 %v118_v32, %v101_v21  ;;  %v1880_v32 = vld [vmem:[#allocation2 + $0x9] ss:$0 sm:$0xff]  ;;  %v1885_v21 = vld [vmem:[#allocation2 + $0xa] ss:$0 sm:$0xff] }
  0xe4   :  { %v213_v53 = vand.u32 2147483647, %v211_v46  ;;  %v249_v11 = vsub.f32 %v1885_v21, %v243_v40  ;;  %v1900_v46 = vld [vmem:[#allocation2 + $0xc] ss:$0 sm:$0xff]  ;;  %v1910_v40 = vld [vmem:[#allocation2 + $0xd] ss:$0 sm:$0xff] }
  0xe5   :  { %1487 = vset.pattern.permute.xlu0 %v2185_v56  ;;  %v1876_v62 = vpop.permute.xlu1 %246  ;;  %v139_v12 = vadd.f32 %v137_v30, %v120_v43  ;;  %v194_v56 = vand.u32 2147483647, %v192_v33  ;;  %v230_v30 = vsub.f32 %v1880_v32, %v224_v17  ;;  %v1888_v43 = vld [vmem:[#allocation2 + $0xb] ss:$0 sm:$0xff] }
  0xe6   :  { %1206 = vperm.xlu0 %1487, %v1700_v25   ;;  %1439 = vset.pattern.permute.xlu1 %v2190_v18 }
  0xe7   :  { %641 = vperm.xlu1 %1439, %v1649_v4   ;;  %v1883_v50 = vpop.permute.xlu0 %693  ;;  %v158_v39 = vadd.f32 %v156_v37, %v139_v12  ;;  %v268_v4 = vsub.f32 %v1888_v43, %v1777_v41  ;;  %v232_v17 = vand.u32 2147483647, %v230_v30  ;;  %v1904_v41 = vld [vmem:[#allocation2 + $0xe] ss:$0 sm:$0xff] }
  0xe9   :  { %v177_v29 = vadd.f32 %v175_v52, %v158_v39  ;;  %v270_v33 = vand.u32 2147483647, %v268_v4  ;;  %v251_v39 = vand.u32 2147483647, %v249_v11  ;;  %v325_v11 = vsub.f32 %v1904_v41, %v1785_v44 }
  0xea   :  { %1488 = vset.pattern.permute.xlu0 %v2189_v36  ;;  %v1891_v28 = vpop.permute.xlu1 %265 }
  0xeb   :  { %626 = vperm.xlu0 %1488, %v1653_v5   ;;  %645 = vperm.xlu1 %1439, %v1653_v5   ;;  %v196_v12 = vadd.f32 %v194_v56, %v177_v29 }
  0xec   :  { %v1898_v37 = vpop.permute.xlu0 %113 }
  0xed   :  { %v215_v15 = vadd.f32 %v213_v53, %v196_v12  ;;  %v117_v9 = vsub.f32 %v1839_v3, %v1898_v37 }
  0xef   :  { %1440 = vset.pattern.permute.xlu1 %v1584_v19  ;;  %v281_v52 = vpop.permute.xlu1 %280  ;;  %v234_v36 = vadd.f32 %v232_v17, %v215_v15  ;;  %1240 = vperm.xlu0 %1488, %v1695_v22  }
  0xf0   :  { %674 = vperm.xlu1 %1440, %v1700_v25   ;;  %v1907_v5 = vpop.permute.xlu0 %727  ;;  %v287_v29 = vsub.f32 %v1900_v46, %v281_v52 }
  0xf1   :  { %v253_v56 = vadd.f32 %v251_v39, %v234_v36  ;;  %v327_v36 = vand.u32 2147483647, %v325_v11 }
  0xf2   :  { %v289_v19 = vand.u32 2147483647, %v287_v29 }
  0xf3   :  { %v272_v53 = vadd.f32 %v270_v33, %v253_v56  ;;  %1492 = vset.pattern.permute.xlu0 %v2190_v18  ;;  %v1932_v56 = vld [vmem:[#allocation2 + $0xf] ss:$0 sm:$0xff] }
  0xf4   :  { %1441 = vset.pattern.permute.xlu1 %v1570_v1  ;;  %v300_v30 = vpop.permute.xlu1 %299  ;;  %1263 = vperm.xlu0 %1492, %v1700_v25  }
  0xf5   :  { %v306_v4 = vsub.f32 %v1910_v40, %v300_v30  ;;  %689 = vperm.xlu1 %1441, %v1695_v22   ;;  %v1919_v12 = vpop.permute.xlu0 %750  ;;  %v291_v17 = vadd.f32 %v289_v19, %v272_v53  ;;  %v1935_v53 = vld [vmem:[#allocation2 + $0x11] ss:$0 sm:$0xff]  ;;  %v1941_v30 = vld [vmem:[#allocation2 + $0x10] ss:$0 sm:$0xff] }
  0xf7   :  { %v308_v15 = vand.u32 2147483647, %v306_v4  ;;  %v382_v4 = vsub.f32 %v1935_v53, %v1793_v47 }
  0xf8   :  { %v1921_v39 = vpop.permute.xlu1 %303 }
  0xf9   :  { %1444 = vset.pattern.permute.xlu1 %v1569_v0  ;;  %v310_v44 = vadd.f32 %v308_v15, %v291_v17  ;;  %v60_v15 = vsub.f32 %v1833_v61, %v1852_v2  ;;  %v384_v18 = vand.u32 2147483647, %v382_v4 }
  0xfa   :  { %v1924_v33 = vpop.permute.xlu0 %170  ;;  %708 = vperm.xlu1 %1444, %v1695_v22  }
  0xfb   :  { %v329_v1 = vadd.f32 %v327_v36, %v310_v44  ;;  %v62_v47 = vand.u32 2147483647, %v60_v15 }
  0xfd   :  { %v1927_v52 = vpop.permute.xlu1 %322 }
  0xfe   :  { %712 = vperm.xlu1 %1444, %v1700_v25   ;;  %v1930_v29 = vpop.permute.xlu0 %784 }
 0x102   :  { %1445 = vset.pattern.permute.xlu1 %v1573_v8  ;;  %v338_v11 = vpop.permute.xlu1 %337 }
 0x103   :  { %731 = vperm.xlu1 %1445, %v1700_v25   ;;  %v1938_v0 = vpop.permute.xlu0 %807  ;;  %v344_v19 = vsub.f32 %v1932_v56, %v338_v11  ;;  %v79_v11 = vsub.f32 %v1824_v58, %v1757_v35 }
 0x105   :  { %v346_v36 = vand.u32 2147483647, %v344_v19  ;;  %v81_v2 = vand.u32 2147483647, %v79_v11  ;;  %v1984_v11 = vld [vmem:[#allocation2 + $0x13] ss:$0 sm:$0xff] }
 0x107   :  { %1446 = vset.pattern.permute.xlu1 %v1575_v10  ;;  %v357_v8 = vpop.permute.xlu1 %356  ;;  %v348_v26 = vadd.f32 %v346_v36, %v329_v1  ;;  %v83_v58 = vadd.f32 %v81_v2, %v62_v47  ;;  %v119_v36 = vand.u32 2147483647, %v117_v9 }
 0x108   :  { %v363_v17 = vsub.f32 %v1941_v30, %v357_v8  ;;  %v1949_v44 = vpop.permute.xlu0 %227  ;;  %746 = vperm.xlu1 %1446, %v1695_v22   ;;  %v98_v8 = vsub.f32 %v1829_v60, %v1765_v38  ;;  %v1971_v38 = vld [vmem:[#allocation2 + $0x12] ss:$0 sm:$0xff]  ;;  %v1973_v60 = vld [vmem:[#allocation2 + $0x14] ss:$0 sm:$0xff] }
 0x10a   :  { %v365_v27 = vand.u32 2147483647, %v363_v17  ;;  %v100_v4 = vand.u32 2147483647, %v98_v8  ;;  %v155_v17 = vsub.f32 %v1850_v34, %v1795_v48  ;;  %v193_v34 = vsub.f32 %v1862_v13, %v1817_v55 }
 0x10b   :  { %v1954_v19 = vpop.permute.xlu1 %360  ;;  %v231_v13 = vsub.f32 %v1880_v32, %v1949_v44  ;;  %v2013_v32 = vld [vmem:[#allocation2 + $0x17] ss:$0 sm:$0xff] }
 0x10c   :  { %1449 = vset.pattern.permute.xlu1 %v1571_v6  ;;  %v1957_v61 = vpop.permute.xlu0 %841  ;;  %v367_v10 = vadd.f32 %v365_v27, %v348_v26  ;;  %v136_v26 = vsub.f32 %v1842_v24, %v1787_v45  ;;  %v102_v27 = vadd.f32 %v100_v4, %v83_v58  ;;  %v174_v45 = vsub.f32 %v1858_v63, %v1924_v33 }
 0x10d   :  { %765 = vperm.xlu1 %1449, %v1695_v22   ;;  %v439_v24 = vsub.f32 %v1973_v60, %v1799_v49  ;;  %v157_v8 = vand.u32 2147483647, %v155_v17  ;;  %v233_v17 = vand.u32 2147483647, %v231_v13 }
 0x10e   :  { %v386_v35 = vadd.f32 %v384_v18, %v367_v10  ;;  %v121_v3 = vadd.f32 %v119_v36, %v102_v27  ;;  %v138_v15 = vand.u32 2147483647, %v136_v26  ;;  %v176_v58 = vand.u32 2147483647, %v174_v45  ;;  %v2006_v45 = vld [vmem:[#allocation2 + $0x15] ss:$0 sm:$0xff] }
 0x10f   :  { %v441_v48 = vand.u32 2147483647, %v439_v24  ;;  %v250_v24 = vsub.f32 %v1885_v21, %v1876_v62  ;;  %v2020_v62 = vld [vmem:[#allocation2 + $0x16] ss:$0 sm:$0xff] }
 0x110   :  { %v1964_v1 = vpop.permute.xlu1 %379  ;;  %v140_v47 = vadd.f32 %v138_v15, %v121_v3  ;;  %v195_v3 = vand.u32 2147483647, %v193_v34 }
 0x111   :  { %769 = vperm.xlu1 %1449, %v1700_v25   ;;  %v1967_v6 = vpop.permute.xlu0 %864 }
 0x112   :  { %v159_v49 = vadd.f32 %v157_v8, %v140_v47  ;;  %v269_v8 = vsub.f32 %v1888_v43, %v1891_v28 }
 0x114   :  { %v178_v26 = vadd.f32 %v176_v58, %v159_v49 }
 0x115   :  { %1450 = vset.pattern.permute.xlu1 %v1579_v14  ;;  %v395_v18 = vpop.permute.xlu1 %394 }
 0x116   :  { %v285_v37 = vpop.permute.xlu0 %284  ;;  %788 = vperm.xlu1 %1450, %v1700_v25   ;;  %v401_v9 = vsub.f32 %v1971_v38, %v395_v18  ;;  %v212_v18 = vsub.f32 %v1869_v42, %v1827_v59 }
 0x117   :  { %v288_v58 = vsub.f32 %v1900_v46, %v285_v37 }
 0x118   :  { %v403_v14 = vand.u32 2147483647, %v401_v9  ;;  %v197_v9 = vadd.f32 %v195_v3, %v178_v26 }
 0x119   :  { %v290_v28 = vand.u32 2147483647, %v288_v58 }
 0x11a   :  { %1451 = vset.pattern.permute.xlu1 %v1581_v16  ;;  %v414_v10 = vpop.permute.xlu1 %413  ;;  %v1987_v2 = vpop.permute.xlu0 %898  ;;  %v405_v33 = vadd.f32 %v403_v14, %v386_v35 }
 0x11b   :  { %v420_v4 = vsub.f32 %v1984_v11, %v414_v10  ;;  %803 = vperm.xlu1 %1451, %v1695_v22   ;;  %v252_v10 = vand.u32 2147483647, %v250_v24 }
 0x11d   :  { %v422_v63 = vand.u32 2147483647, %v420_v4 }
 0x11e   :  { %v1993_v36 = vpop.permute.xlu1 %417 }
 0x11f   :  { %1454 = vset.pattern.permute.xlu1 %v1572_v7  ;;  %v1996_v16 = vpop.permute.xlu0 %921  ;;  %v424_v27 = vadd.f32 %v422_v63, %v405_v33  ;;  %v214_v7 = vand.u32 2147483647, %v212_v18  ;;  %v271_v63 = vand.u32 2147483647, %v269_v8  ;;  %v307_v33 = vsub.f32 %v1910_v40, %v1921_v39 }
 0x120   :  { %822 = vperm.xlu1 %1454, %v1695_v22  }
 0x121   :  { %v443_v55 = vadd.f32 %v441_v48, %v424_v27  ;;  %v216_v47 = vadd.f32 %v214_v7, %v197_v9  ;;  %v309_v9 = vand.u32 2147483647, %v307_v33  ;;  %v326_v7 = vsub.f32 %v1904_v41, %v1927_v52 }
 0x122   :  { %v2195_v41 = vmov 12  }
 0x123   :  { %v2003_v35 = vpop.permute.xlu1 %436  ;;  %v235_v44 = vadd.f32 %v233_v17, %v216_v47  ;;  %v328_v24 = vand.u32 2147483647, %v326_v7 }
 0x124   :  { %v342_v15 = vpop.permute.xlu0 %341  ;;  %826 = vperm.xlu1 %1454, %v1700_v25  }
 0x125   :  { %v254_v4 = vadd.f32 %v252_v10, %v235_v44  ;;  %v2045_v44 = vld [vmem:[#allocation2 + $0x1a] ss:$0 sm:$0xff] }
 0x126   :  { %v553_v58 = vsub.f32 %v2045_v44, %v1815_v54 }
 0x128   :  { %1455 = vset.pattern.permute.xlu1 %v1585_v20  ;;  %v452_v59 = vpop.permute.xlu1 %451  ;;  %v2011_v42 = vpop.permute.xlu0 %955  ;;  %v496_v20 = vsub.f32 %v2013_v32, %v1807_v51  ;;  %v273_v51 = vadd.f32 %v271_v63, %v254_v4 }
 0x129   :  { %845 = vperm.xlu1 %1455, %v1700_v25   ;;  %v458_v14 = vsub.f32 %v2006_v45, %v452_v59  ;;  %v2043_v59 = vld [vmem:[#allocation2 + $0x18] ss:$0 sm:$0xff] }
 0x12a   :  { %v498_v43 = vand.u32 2147483647, %v496_v20  ;;  %v292_v18 = vadd.f32 %v290_v28, %v273_v51  ;;  %v2056_v20 = vld [vmem:[#allocation2 + $0x19] ss:$0 sm:$0xff] }
 0x12b   :  { %v460_v21 = vand.u32 2147483647, %v458_v14  ;;  %v364_v14 = vsub.f32 %v1941_v30, %v1954_v19  ;;  %v383_v30 = vsub.f32 %v1935_v53, %v1964_v1  ;;  %v421_v53 = vsub.f32 %v1984_v11, %v1993_v36  ;;  %v1322_v36 = vld [vmem:[#allocation2 + $0x1b] ss:$0 sm:$0xff] }
 0x12c   :  { %v311_v39 = vadd.f32 %v309_v9, %v292_v18 }
 0x12d   :  { %1456 = vset.pattern.permute.xlu1 %v1586_v23  ;;  %v471_v48 = vpop.permute.xlu1 %470  ;;  %v2025_v34 = vpop.permute.xlu0 %978  ;;  %v462_v37 = vadd.f32 %v460_v21, %v443_v55  ;;  %v2194_v23 = vmov 11   ;;  %v345_v55 = vsub.f32 %v1932_v56, %v342_v15  ;;  %v366_v21 = vand.u32 2147483647, %v364_v14 }
 0x12e   :  { %v477_v49 = vsub.f32 %v2020_v62, %v471_v48  ;;  %860 = vperm.xlu1 %1456, %v1695_v22   ;;  %v330_v10 = vadd.f32 %v328_v24, %v311_v39  ;;  %v385_v54 = vand.u32 2147483647, %v383_v30  ;;  %v423_v7 = vand.u32 2147483647, %v421_v53 }
 0x12f   :  { %v347_v47 = vand.u32 2147483647, %v345_v55  ;;  %v440_v55 = vsub.f32 %v1973_v60, %v2003_v35 }
 0x130   :  { %v479_v46 = vand.u32 2147483647, %v477_v49  ;;  %v2196_v49 = vmov 13  }
 0x131   :  { %v2031_v26 = vpop.permute.xlu1 %474  ;;  %v349_v8 = vadd.f32 %v347_v47, %v330_v10  ;;  %v442_v47 = vand.u32 2147483647, %v440_v55 }
 0x132   :  { %v399_v27 = vpop.permute.xlu0 %398  ;;  %1459 = vset.pattern.permute.xlu1 %v2194_v23  ;;  %v481_v3 = vadd.f32 %v479_v46, %v462_v37  ;;  %v555_v46 = vand.u32 2147483647, %v553_v58  ;;  %v478_v60 = vsub.f32 %v2020_v62, %v2031_v26  ;;  %v1323_v58 = vld [vmem:[#allocation2 + $0x1c] ss:$0 sm:$0xff] }
 0x133   :  { %879 = vperm.xlu1 %1459, %v1695_v22   ;;  %v402_v19 = vsub.f32 %v1971_v38, %v399_v27  ;;  %v368_v28 = vadd.f32 %v366_v21, %v349_v8  ;;  %v2197_v38 = vmov 14  }
 0x134   :  { %v500_v13 = vadd.f32 %v498_v43, %v481_v3 }
 0x135   :  { %v404_v37 = vand.u32 2147483647, %v402_v19  ;;  %v387_v1 = vadd.f32 %v385_v54, %v368_v28 }
 0x136   :  { %v2038_v17 = vpop.permute.xlu1 %493  ;;  %v2040_v40 = vpop.permute.xlu0 %1012 }
 0x137   :  { %883 = vperm.xlu1 %1459, %v1700_v25   ;;  %v406_v18 = vadd.f32 %v404_v37, %v387_v1  ;;  %v2200_v1 = vmov 17  }
 0x139   :  { %v425_v11 = vadd.f32 %v423_v7, %v406_v18 }
 0x13b   :  { %1460 = vset.pattern.permute.xlu1 %v2195_v41  ;;  %v509_v52 = vpop.permute.xlu1 %508  ;;  %v2050_v56 = vpop.permute.xlu0 %1035  ;;  %v2198_v41 = vmov 15   ;;  %v444_v35 = vadd.f32 %v442_v47, %v425_v11  ;;  %v1325_v11 = vld [vmem:[#allocation2 + $0x1e] ss:$0 sm:$0xff] }
 0x13c   :  { %902 = vperm.xlu1 %1460, %v1700_v25   ;;  %v515_v15 = vsub.f32 %v2043_v59, %v509_v52 }
 0x13e   :  { %v517_v4 = vand.u32 2147483647, %v515_v15  ;;  %v2077_v15 = vld [vmem:[#allocation2 + $0x1d] ss:$0 sm:$0xff] }
 0x13f   :  { %v610_v21 = vsub.f32 %v2077_v15, %v1822_v57 }
 0x140   :  { %v456_v48 = vpop.permute.xlu0 %455  ;;  %1461 = vset.pattern.permute.xlu1 %v2196_v49  ;;  %v528_v63 = vpop.permute.xlu1 %527  ;;  %v519_v51 = vadd.f32 %v517_v4, %v500_v13  ;;  %v480_v4 = vand.u32 2147483647, %v478_v60 }
 0x141   :  { %v534_v43 = vsub.f32 %v2056_v20, %v528_v63  ;;  %917 = vperm.xlu1 %1461, %v1695_v22   ;;  %v459_v13 = vsub.f32 %v2006_v45, %v456_v48  ;;  %v497_v48 = vsub.f32 %v2013_v32, %v2038_v17  ;;  %v2199_v63 = vmov 16  }
 0x143   :  { %v536_v33 = vand.u32 2147483647, %v534_v43  ;;  %v461_v14 = vand.u32 2147483647, %v459_v13  ;;  %v612_v43 = vand.u32 2147483647, %v610_v21 }
 0x144   :  { %v532_v23 = vpop.permute.xlu1 %531  ;;  %v2064_v3 = vpop.permute.xlu0 %1069  ;;  %v499_v57 = vand.u32 2147483647, %v497_v48  ;;  %v1330_v48 = vld [vmem:[#allocation2 + $0x21] ss:$0 sm:$0xff] }
 0x145   :  { %1464 = vset.pattern.permute.xlu1 %v2197_v38  ;;  %v538_v27 = vadd.f32 %v536_v33, %v519_v51  ;;  %v463_v8 = vadd.f32 %v461_v14, %v444_v35  ;;  %v535_v32 = vsub.f32 %v2056_v20, %v532_v23  ;;  %v2201_v20 = vmov 18   ;;  %v1326_v35 = vld [vmem:[#allocation2 + $0x1f] ss:$0 sm:$0xff] }
 0x146   :  { %936 = vperm.xlu1 %1464, %v1695_v22  }
 0x147   :  { %v557_v9 = vadd.f32 %v555_v46, %v538_v27  ;;  %v482_v28 = vadd.f32 %v480_v4, %v463_v8  ;;  %v537_v7 = vand.u32 2147483647, %v535_v32 }
 0x149   :  { %v551_v39 = vpop.permute.xlu1 %550  ;;  %v2073_v24 = vpop.permute.xlu0 %1092  ;;  %v501_v17 = vadd.f32 %v499_v57, %v482_v28  ;;  %v2203_v57 = vmov 20  }
 0x14a   :  { %940 = vperm.xlu1 %1464, %v1700_v25  }
 0x14e   :  { %v513_v10 = vpop.permute.xlu0 %512  ;;  %1465 = vset.pattern.permute.xlu1 %v2198_v41  ;;  %v566_v52 = vpop.permute.xlu1 %565 }
 0x14f   :  { %v572_v45 = vsub.f32 %v1322_v36, %v566_v52  ;;  %959 = vperm.xlu1 %1465, %v1700_v25   ;;  %v516_v49 = vsub.f32 %v2043_v59, %v513_v10 }
 0x151   :  { %v574_v30 = vand.u32 2147483647, %v572_v45  ;;  %v518_v37 = vand.u32 2147483647, %v516_v49 }
 0x152   :  { %v2084_v19 = vpop.permute.xlu0 %1126 }
 0x153   :  { %1466 = vset.pattern.permute.xlu1 %v2199_v63  ;;  %v585_v62 = vpop.permute.xlu1 %584  ;;  %v576_v46 = vadd.f32 %v574_v30, %v557_v9  ;;  %v520_v38 = vadd.f32 %v518_v37, %v501_v17  ;;  %v554_v9 = vsub.f32 %v2045_v44, %v551_v39  ;;  %v697_v37 = vsub.f32 %v1330_v48, %v1883_v50 }
 0x154   :  { %v591_v26 = vsub.f32 %v1323_v58, %v585_v62  ;;  %974 = vperm.xlu1 %1466, %v1695_v22   ;;  %v2204_v50 = vmov 21  }
 0x155   :  { %v539_v13 = vadd.f32 %v537_v7, %v520_v38  ;;  %v556_v14 = vand.u32 2147483647, %v554_v9 }
 0x156   :  { %v593_v54 = vand.u32 2147483647, %v591_v26 }
 0x157   :  { %v589_v33 = vpop.permute.xlu1 %588  ;;  %v2091_v51 = vpop.permute.xlu0 %1149  ;;  %v558_v60 = vadd.f32 %v556_v14, %v539_v13 }
 0x158   :  { %v595_v53 = vadd.f32 %v593_v54, %v576_v46  ;;  %1469 = vset.pattern.permute.xlu1 %v2200_v1  ;;  %v592_v52 = vsub.f32 %v1323_v58, %v589_v33 }
 0x159   :  { %993 = vperm.xlu1 %1469, %v1695_v22  }
 0x15a   :  { %v614_v59 = vadd.f32 %v612_v43, %v595_v53  ;;  %v594_v21 = vand.u32 2147483647, %v592_v52  ;;  %v2205_v52 = vmov 22  }
 0x15c   :  { %v570_v27 = vpop.permute.xlu0 %569  ;;  %v608_v18 = vpop.permute.xlu1 %607 }
 0x15d   :  { %v573_v55 = vsub.f32 %v1322_v36, %v570_v27  ;;  %997 = vperm.xlu1 %1469, %v1700_v25   ;;  %v2202_v36 = vmov 19   ;;  %v611_v30 = vsub.f32 %v2077_v15, %v608_v18  ;;  %v1329_v15 = vld [vmem:[#allocation2 + $0x20] ss:$0 sm:$0xff] }
 0x15e   :  { %v677_v27 = vsub.f32 %v1329_v15, %v1865_v31 }
 0x15f   :  { %v575_v10 = vand.u32 2147483647, %v573_v55  ;;  %v613_v28 = vand.u32 2147483647, %v611_v30  ;;  %v2206_v30 = vmov 23  }
 0x160   :  { %v2098_v47 = vpop.permute.xlu0 %1183  ;;  %v679_v13 = vand.u32 2147483647, %v677_v27 }
 0x161   :  { %1470 = vset.pattern.permute.xlu1 %v2201_v20  ;;  %v623_v23 = vpop.permute.xlu1 %622  ;;  %v577_v45 = vadd.f32 %v575_v10, %v558_v60  ;;  %v1331_v20 = vld [vmem:[#allocation2 + $0x22] ss:$0 sm:$0xff] }
 0x162   :  { %v629_v41 = vsub.f32 %v1325_v11, %v623_v23  ;;  %1016 = vperm.xlu1 %1470, %v1700_v25  }
 0x163   :  { %v596_v49 = vadd.f32 %v594_v21, %v577_v45 }
 0x164   :  { %v631_v44 = vand.u32 2147483647, %v629_v41 }
 0x165   :  { %v2102_v39 = vpop.permute.xlu0 %1206  ;;  %v615_v33 = vadd.f32 %v613_v28, %v596_v49 }
 0x166   :  { %1471 = vset.pattern.permute.xlu1 %v2202_v36  ;;  %v642_v8 = vpop.permute.xlu1 %641  ;;  %v633_v63 = vadd.f32 %v631_v44, %v614_v59  ;;  %v699_v59 = vand.u32 2147483647, %v697_v37  ;;  %v1333_v36 = vld [vmem:[#allocation2 + $0x24] ss:$0 sm:$0xff] }
 0x167   :  { %v648_v4 = vsub.f32 %v1326_v35, %v642_v8  ;;  %1031 = vperm.xlu1 %1471, %v1695_v22  }
 0x169   :  { %v650_v62 = vand.u32 2147483647, %v648_v4 }
 0x16a   :  { %v627_v58 = vpop.permute.xlu0 %626  ;;  %v646_v26 = vpop.permute.xlu1 %645 }
 0x16b   :  { %v652_v43 = vadd.f32 %v650_v62, %v633_v63  ;;  %v630_v46 = vsub.f32 %v1325_v11, %v627_v58  ;;  %v649_v54 = vsub.f32 %v1326_v35, %v646_v26  ;;  %1474 = vset.pattern.permute.xlu1 %v2203_v57  ;;  %v1332_v11 = vld [vmem:[#allocation2 + $0x23] ss:$0 sm:$0xff] }
 0x16c   :  { %1050 = vperm.xlu1 %1474, %v1695_v22   ;;  %v734_v23 = vsub.f32 %v1332_v11, %v1907_v5  ;;  %v754_v5 = vsub.f32 %v1333_v36, %v1919_v12 }
 0x16d   :  { %654 = vst [vmem:[#allocation7] sm:$0xff] %v652_v43  ;;  %v632_v53 = vand.u32 2147483647, %v630_v46  ;;  %v651_v32 = vand.u32 2147483647, %v649_v54  ;;  %v2207_v43 = vmov 24  }
 0x16e   :  { %v736_v35 = vand.u32 2147483647, %v734_v23  ;;  %v756_v58 = vand.u32 2147483647, %v754_v5  ;;  %v1335_v54 = vld [vmem:[#allocation2 + $0x26] ss:$0 sm:$0xff] }
 0x16f   :  { %v634_v1 = vadd.f32 %v632_v53, %v615_v33  ;;  %v675_v17 = vpop.permute.xlu1 %674  ;;  %v1334_v33 = vld [vmem:[#allocation2 + $0x25] ss:$0 sm:$0xff]  ;;  %v791_v12 = vsub.f32 %v1335_v54, %v1930_v29 }
 0x170   :  { %v678_v38 = vsub.f32 %v1329_v15, %v675_v17  ;;  %1054 = vperm.xlu1 %1474, %v1700_v25  }
 0x171   :  { %v653_v18 = vadd.f32 %v651_v32, %v634_v1  ;;  %v2208_v1 = vmov 25  }
 0x172   :  { %v680_v7 = vand.u32 2147483647, %v678_v38 }
 0x173   :  { %655 = vst [vmem:[#allocation7 + $0x8] sm:$0xff] %v653_v18  ;;  %v1336_v18 = vld [vmem:[#allocation2 + $0x27] ss:$0 sm:$0xff] }
 0x174   :  { %v701_v9 = vadd.f32 %v699_v59, %v680_v7  ;;  %1475 = vset.pattern.permute.xlu1 %v2204_v50  ;;  %v690_v55 = vpop.permute.xlu1 %689  ;;  %v793_v59 = vand.u32 2147483647, %v791_v12  ;;  %v2209_v50 = vmov 26   ;;  %v811_v29 = vsub.f32 %v1336_v18, %v1938_v0 }
 0x175   :  { %v696_v14 = vsub.f32 %v1330_v48, %v690_v55  ;;  %1073 = vperm.xlu1 %1475, %v1700_v25   ;;  %v2213_v12 = vmov 30  }
 0x177   :  { %v698_v10 = vand.u32 2147483647, %v696_v14 }
 0x179   :  { %v700_v41 = vadd.f32 %v698_v10, %v679_v13  ;;  %1476 = vset.pattern.permute.xlu1 %v2205_v52  ;;  %v709_v31 = vpop.permute.xlu1 %708  ;;  %v2210_v52 = vmov 27  }
 0x17a   :  { %v715_v60 = vsub.f32 %v1331_v20, %v709_v31  ;;  %1088 = vperm.xlu1 %1476, %v1695_v22  }
 0x17c   :  { %v717_v45 = vand.u32 2147483647, %v715_v60  ;;  %v1338_v60 = vld [vmem:[#allocation2 + $0x29] ss:$0 sm:$0xff] }
 0x17d   :  { %v713_v44 = vpop.permute.xlu1 %712  ;;  %v848_v0 = vsub.f32 %v1338_v60, %v1957_v61 }
 0x17e   :  { %v719_v8 = vadd.f32 %v717_v45, %v700_v41  ;;  %v716_v21 = vsub.f32 %v1331_v20, %v713_v44  ;;  %1479 = vset.pattern.permute.xlu1 %v2206_v30  ;;  %v813_v20 = vand.u32 2147483647, %v811_v29  ;;  %v1342_v29 = vld [vmem:[#allocation2 + $0x2d] ss:$0 sm:$0xff] }
 0x17f   :  { %1107 = vperm.xlu1 %1479, %v1695_v22  }
 0x180   :  { %v718_v4 = vand.u32 2147483647, %v716_v21  ;;  %v738_v48 = vadd.f32 %v736_v35, %v719_v8  ;;  %v2211_v21 = vmov 28  }
 0x182   :  { %v720_v49 = vadd.f32 %v718_v4, %v701_v9  ;;  %v732_v63 = vpop.permute.xlu1 %731 }
 0x183   :  { %v735_v62 = vsub.f32 %v1332_v11, %v732_v63  ;;  %1111 = vperm.xlu1 %1479, %v1700_v25   ;;  %v1339_v63 = vld [vmem:[#allocation2 + $0x2a] ss:$0 sm:$0xff] }
 0x184   :  { %v868_v61 = vsub.f32 %v1339_v63, %v1967_v6 }
 0x185   :  { %v737_v26 = vand.u32 2147483647, %v735_v62 }
 0x187   :  { %v739_v28 = vadd.f32 %v737_v26, %v720_v49  ;;  %1480 = vset.pattern.permute.xlu1 %v2207_v43  ;;  %v747_v46 = vpop.permute.xlu1 %746  ;;  %v2212_v26 = vmov 29  }
 0x188   :  { %v753_v57 = vsub.f32 %v1333_v36, %v747_v46  ;;  %1130 = vperm.xlu1 %1480, %v1700_v25   ;;  %v1337_v36 = vld [vmem:[#allocation2 + $0x28] ss:$0 sm:$0xff] }
 0x189   :  { %v758_v37 = vadd.f32 %v756_v58, %v739_v28 }
 0x18a   :  { %v755_v15 = vand.u32 2147483647, %v753_v57 }
 0x18c   :  { %v757_v53 = vadd.f32 %v755_v15, %v738_v48  ;;  %1481 = vset.pattern.permute.xlu1 %v2208_v1  ;;  %v766_v32 = vpop.permute.xlu1 %765  ;;  %v850_v48 = vand.u32 2147483647, %v848_v0  ;;  %v1341_v1 = vld [vmem:[#allocation2 + $0x2c] ss:$0 sm:$0xff] }
 0x18d   :  { %v772_v17 = vsub.f32 %v1334_v33, %v766_v32  ;;  %1145 = vperm.xlu1 %1481, %v1695_v22   ;;  %v905_v6 = vsub.f32 %v1341_v1, %v1987_v2 }
 0x18f   :  { %v774_v38 = vand.u32 2147483647, %v772_v17 }
 0x190   :  { %v770_v27 = vpop.permute.xlu1 %769 }
 0x191   :  { %v776_v7 = vadd.f32 %v774_v38, %v757_v53  ;;  %v773_v9 = vsub.f32 %v1334_v33, %v770_v27  ;;  %1484 = vset.pattern.permute.xlu1 %v2209_v50  ;;  %v1340_v38 = vld [vmem:[#allocation2 + $0x2b] ss:$0 sm:$0xff]  ;;  %v907_v50 = vand.u32 2147483647, %v905_v6 }
 0x192   :  { %1164 = vperm.xlu1 %1484, %v1695_v22  }
 0x193   :  { %v775_v55 = vand.u32 2147483647, %v773_v9  ;;  %v795_v13 = vadd.f32 %v793_v59, %v776_v7 }
 0x195   :  { %v777_v11 = vadd.f32 %v775_v55, %v758_v37  ;;  %v789_v14 = vpop.permute.xlu1 %788  ;;  %v870_v37 = vand.u32 2147483647, %v868_v61 }
 0x196   :  { %v792_v10 = vsub.f32 %v1335_v54, %v789_v14  ;;  %1168 = vperm.xlu1 %1484, %v1700_v25  }
 0x198   :  { %v794_v23 = vand.u32 2147483647, %v792_v10 }
 0x19a   :  { %v796_v41 = vadd.f32 %v794_v23, %v777_v11  ;;  %1485 = vset.pattern.permute.xlu1 %v2210_v52  ;;  %v804_v31 = vpop.permute.xlu1 %803 }
 0x19b   :  { %v810_v35 = vsub.f32 %v1336_v18, %v804_v31  ;;  %1187 = vperm.xlu1 %1485, %v1700_v25   ;;  %v2214_v18 = vmov 31  }
 0x19c   :  { %v815_v45 = vadd.f32 %v813_v20, %v796_v41 }
 0x19d   :  { %v812_v44 = vand.u32 2147483647, %v810_v35 }
 0x19f   :  { %v814_v8 = vadd.f32 %v812_v44, %v795_v13  ;;  %1486 = vset.pattern.permute.xlu1 %v2211_v21  ;;  %v823_v30 = vpop.permute.xlu1 %822 }
 0x1a0   :  { %v829_v4 = vsub.f32 %v1337_v36, %v823_v30  ;;  %1202 = vperm.xlu1 %1486, %v1695_v22  }
 0x1a2   :  { %v831_v5 = vand.u32 2147483647, %v829_v4 }
 0x1a3   :  { %v827_v49 = vpop.permute.xlu1 %826 }
 0x1a4   :  { %v833_v62 = vadd.f32 %v831_v5, %v814_v8  ;;  %v830_v58 = vsub.f32 %v1337_v36, %v827_v49  ;;  %1489 = vset.pattern.permute.xlu1 %v2212_v26  ;;  %v1343_v36 = vld [vmem:[#allocation2 + $0x2e] ss:$0 sm:$0xff]  ;;  %v1345_v49 = vld [vmem:[#allocation2 + $0x30] ss:$0 sm:$0xff] }
 0x1a5   :  { %1221 = vperm.xlu1 %1489, %v1695_v22   ;;  %v982_v26 = vsub.f32 %v1345_v49, %v2025_v34 }
 0x1a6   :  { %v832_v28 = vand.u32 2147483647, %v830_v58  ;;  %v852_v43 = vadd.f32 %v850_v48, %v833_v62 }
 0x1a8   :  { %v834_v46 = vadd.f32 %v832_v28, %v815_v45  ;;  %v846_v54 = vpop.permute.xlu1 %845  ;;  %v1344_v45 = vld [vmem:[#allocation2 + $0x2f] ss:$0 sm:$0xff] }
 0x1a9   :  { %v849_v57 = vsub.f32 %v1338_v60, %v846_v54  ;;  %1225 = vperm.xlu1 %1489, %v1700_v25   ;;  %v962_v0 = vsub.f32 %v1344_v45, %v2011_v42 }
 0x1ab   :  { %v851_v15 = vand.u32 2147483647, %v849_v57  ;;  %v964_v4 = vand.u32 2147483647, %v962_v0  ;;  %v1351_v0 = vld [vmem:[#allocation2 + $0x36] ss:$0 sm:$0xff] }
 0x1ad   :  { %v853_v33 = vadd.f32 %v851_v15, %v834_v46  ;;  %1490 = vset.pattern.permute.xlu1 %v2213_v12  ;;  %v861_v53 = vpop.permute.xlu1 %860  ;;  %v984_v46 = vand.u32 2147483647, %v982_v26  ;;  %v1347_v15 = vld [vmem:[#allocation2 + $0x32] ss:$0 sm:$0xff]  ;;  %v1353_v26 = vld [vmem:[#allocation2 + $0x38] ss:$0 sm:$0xff] }
 0x1ae   :  { %v867_v32 = vsub.f32 %v1339_v63, %v861_v53  ;;  %1244 = vperm.xlu1 %1490, %v1700_v25   ;;  %v925_v25 = vsub.f32 %v1342_v29, %v1996_v16  ;;  %v1346_v53 = vld [vmem:[#allocation2 + $0x31] ss:$0 sm:$0xff] }
 0x1af   :  { %v872_v17 = vadd.f32 %v870_v37, %v853_v33 }
 0x1b0   :  { %v869_v59 = vand.u32 2147483647, %v867_v32  ;;  %v927_v2 = vand.u32 2147483647, %v925_v25 }
 0x1b2   :  { %v871_v27 = vadd.f32 %v869_v59, %v852_v43  ;;  %1491 = vset.pattern.permute.xlu1 %v2214_v18  ;;  %v880_v7 = vpop.permute.xlu1 %879  ;;  %v1348_v18 = vld [vmem:[#allocation2 + $0x33] ss:$0 sm:$0xff] }
 0x1b3   :  { %v886_v9 = vsub.f32 %v1340_v38, %v880_v7  ;;  %1259 = vperm.xlu1 %1491, %v1695_v22  }
 0x1b5   :  { %v888_v55 = vand.u32 2147483647, %v886_v9 }
 0x1b6   :  { %v884_v13 = vpop.permute.xlu1 %883 }
 0x1b7   :  { %v890_v11 = vadd.f32 %v888_v55, %v871_v27  ;;  %v887_v14 = vsub.f32 %v1340_v38, %v884_v13  ;;  %v1039_v55 = vsub.f32 %v1348_v18, %v2050_v56 }
 0x1b9   :  { %v909_v10 = vadd.f32 %v907_v50, %v890_v11  ;;  %v889_v20 = vand.u32 2147483647, %v887_v14  ;;  %v1041_v14 = vand.u32 2147483647, %v1039_v55 }
 0x1bb   :  { %v903_v23 = vpop.permute.xlu1 %902  ;;  %v891_v52 = vadd.f32 %v889_v20, %v872_v17 }
 0x1bc   :  { %v906_v41 = vsub.f32 %v1341_v1, %v903_v23  ;;  %v1019_v1 = vsub.f32 %v1347_v15, %v2040_v40  ;;  %v1350_v23 = vld [vmem:[#allocation2 + $0x35] ss:$0 sm:$0xff] }
 0x1be   :  { %v908_v31 = vand.u32 2147483647, %v906_v41  ;;  %v1021_v38 = vand.u32 2147483647, %v1019_v1 }
 0x1c0   :  { %v910_v60 = vadd.f32 %v908_v31, %v891_v52  ;;  %v918_v35 = vpop.permute.xlu1 %917  ;;  %v1349_v52 = vld [vmem:[#allocation2 + $0x34] ss:$0 sm:$0xff]  ;;  %v1076_v31 = vsub.f32 %v1350_v23, %v2064_v3 }
 0x1c1   :  { %v924_v44 = vsub.f32 %v1342_v29, %v918_v35 }
 0x1c2   :  { %v929_v22 = vadd.f32 %v927_v2, %v910_v60 }
 0x1c3   :  { %v926_v8 = vand.u32 2147483647, %v924_v44  ;;  %v1078_v44 = vand.u32 2147483647, %v1076_v31 }
 0x1c5   :  { %v937_v21 = vpop.permute.xlu1 %936  ;;  %v928_v48 = vadd.f32 %v926_v8, %v909_v10 }
 0x1c6   :  { %v943_v30 = vsub.f32 %v1343_v36, %v937_v21 }
 0x1c8   :  { %v945_v16 = vand.u32 2147483647, %v943_v30 }
 0x1c9   :  { %v941_v5 = vpop.permute.xlu1 %940 }
 0x1ca   :  { %v947_v63 = vadd.f32 %v945_v16, %v928_v48  ;;  %v944_v62 = vsub.f32 %v1343_v36, %v941_v5 }
 0x1cc   :  { %v966_v58 = vadd.f32 %v964_v4, %v947_v63  ;;  %v946_v28 = vand.u32 2147483647, %v944_v62  ;;  %v1096_v4 = vsub.f32 %v1351_v0, %v2073_v24 }
 0x1ce   :  { %v960_v43 = vpop.permute.xlu1 %959  ;;  %v948_v54 = vadd.f32 %v946_v28, %v929_v22 }
 0x1cf   :  { %v963_v61 = vsub.f32 %v1344_v45, %v960_v43 }
 0x1d1   :  { %v965_v57 = vand.u32 2147483647, %v963_v61  ;;  %v1352_v61 = vld [vmem:[#allocation2 + $0x37] ss:$0 sm:$0xff] }
 0x1d3   :  { %v967_v42 = vadd.f32 %v965_v57, %v948_v54  ;;  %v975_v37 = vpop.permute.xlu1 %974 }
 0x1d4   :  { %v981_v33 = vsub.f32 %v1345_v49, %v975_v37  ;;  %v1098_v49 = vand.u32 2147483647, %v1096_v4 }
 0x1d5   :  { %v986_v12 = vadd.f32 %v984_v46, %v967_v42  ;;  %v1133_v46 = vsub.f32 %v1353_v26, %v2084_v19 }
 0x1d6   :  { %v983_v32 = vand.u32 2147483647, %v981_v33 }
 0x1d7   :  { %v1135_v37 = vand.u32 2147483647, %v1133_v46 }
 0x1d8   :  { %v994_v17 = vpop.permute.xlu1 %993  ;;  %v985_v6 = vadd.f32 %v983_v32, %v966_v58 }
 0x1d9   :  { %v1000_v59 = vsub.f32 %v1346_v53, %v994_v17 }
 0x1db   :  { %v1002_v34 = vand.u32 2147483647, %v1000_v59 }
 0x1dc   :  { %v998_v27 = vpop.permute.xlu1 %997 }
 0x1dd   :  { %v1004_v7 = vadd.f32 %v1002_v34, %v985_v6  ;;  %v1001_v9 = vsub.f32 %v1346_v53, %v998_v27 }
 0x1df   :  { %v1023_v50 = vadd.f32 %v1021_v38, %v1004_v7  ;;  %v1003_v13 = vand.u32 2147483647, %v1001_v9  ;;  %v1356_v9 = vld [vmem:[#allocation2 + $0x3b] ss:$0 sm:$0xff] }
 0x1e1   :  { %v1017_v29 = vpop.permute.xlu1 %1016  ;;  %v1005_v10 = vadd.f32 %v1003_v13, %v986_v12  ;;  %v1354_v12 = vld [vmem:[#allocation2 + $0x39] ss:$0 sm:$0xff]  ;;  %v1355_v13 = vld [vmem:[#allocation2 + $0x3a] ss:$0 sm:$0xff] }
 0x1e2   :  { %v1020_v11 = vsub.f32 %v1347_v15, %v1017_v29  ;;  %v1153_v17 = vsub.f32 %v1354_v12, %v2091_v51  ;;  %v1190_v29 = vsub.f32 %v1356_v9, %v2098_v47 }
 0x1e4   :  { %v1022_v25 = vand.u32 2147483647, %v1020_v11  ;;  %v1155_v34 = vand.u32 2147483647, %v1153_v17 }
 0x1e6   :  { %v1024_v40 = vadd.f32 %v1022_v25, %v1005_v10  ;;  %v1032_v20 = vpop.permute.xlu1 %1031  ;;  %v1192_v25 = vand.u32 2147483647, %v1190_v29 }
 0x1e7   :  { %v1038_v41 = vsub.f32 %v1348_v18, %v1032_v20 }
 0x1e8   :  { %v1043_v2 = vadd.f32 %v1041_v14, %v1024_v40 }
 0x1e9   :  { %v1040_v60 = vand.u32 2147483647, %v1038_v41 }
 0x1eb   :  { %v1051_v35 = vpop.permute.xlu1 %1050  ;;  %v1042_v22 = vadd.f32 %v1040_v60, %v1023_v50 }
 0x1ec   :  { %v1057_v45 = vsub.f32 %v1349_v52, %v1051_v35 }
 0x1ee   :  { %v1059_v56 = vand.u32 2147483647, %v1057_v45 }
 0x1ef   :  { %v1055_v36 = vpop.permute.xlu1 %1054 }
 0x1f0   :  { %v1061_v8 = vadd.f32 %v1059_v56, %v1042_v22  ;;  %v1058_v21 = vsub.f32 %v1349_v52, %v1055_v36 }
 0x1f2   :  { %v1080_v30 = vadd.f32 %v1078_v44, %v1061_v8  ;;  %v1060_v48 = vand.u32 2147483647, %v1058_v21  ;;  %v1241_v21 = vpop.permute.xlu0 %1240 }
 0x1f4   :  { %v1074_v16 = vpop.permute.xlu1 %1073  ;;  %v1062_v63 = vadd.f32 %v1060_v48, %v1043_v2 }
 0x1f5   :  { %v1077_v5 = vsub.f32 %v1350_v23, %v1074_v16  ;;  %v1357_v23 = vld [vmem:[#allocation2 + $0x3c] ss:$0 sm:$0xff] }
 0x1f6   :  { %v1210_v31 = vsub.f32 %v1357_v23, %v2102_v39 }
 0x1f7   :  { %v1079_v62 = vand.u32 2147483647, %v1077_v5 }
 0x1f8   :  { %v1212_v44 = vand.u32 2147483647, %v1210_v31 }
 0x1f9   :  { %v1081_v3 = vadd.f32 %v1079_v62, %v1062_v63  ;;  %v1089_v58 = vpop.permute.xlu1 %1088  ;;  %v1264_v63 = vpop.permute.xlu0 %1263  ;;  %v1359_v62 = vld [vmem:[#allocation2 + $0x3e] ss:$0 sm:$0xff] }
 0x1fa   :  { %v1095_v28 = vsub.f32 %v1351_v0, %v1089_v58 }
 0x1fb   :  { %v1100_v43 = vadd.f32 %v1098_v49, %v1081_v3  ;;  %v1360_v49 = vld [vmem:[#allocation2 + $0x3f] ss:$0 sm:$0xff] }
 0x1fc   :  { %v1097_v54 = vand.u32 2147483647, %v1095_v28  ;;  %v1267_v58 = vsub.f32 %v1360_v49, %v1264_v63  ;;  %v1247_v28 = vsub.f32 %v1359_v62, %v1241_v21 }
 0x1fe   :  { %v1108_v57 = vpop.permute.xlu1 %1107  ;;  %v1099_v15 = vadd.f32 %v1097_v54, %v1080_v30  ;;  %v1358_v30 = vld [vmem:[#allocation2 + $0x3d] ss:$0 sm:$0xff] }
 0x1ff   :  { %v1114_v42 = vsub.f32 %v1352_v61, %v1108_v57 }
 0x201   :  { %v1116_v24 = vand.u32 2147483647, %v1114_v42  ;;  %v1269_v42 = vand.u32 2147483647, %v1267_v58 }
 0x202   :  { %v1112_v33 = vpop.permute.xlu1 %1111 }
 0x203   :  { %v1118_v53 = vadd.f32 %v1116_v24, %v1099_v15  ;;  %v1115_v1 = vsub.f32 %v1352_v61, %v1112_v33  ;;  %v1249_v15 = vand.u32 2147483647, %v1247_v28 }
 0x205   :  { %v1137_v32 = vadd.f32 %v1135_v37, %v1118_v53  ;;  %v1117_v59 = vand.u32 2147483647, %v1115_v1 }
 0x207   :  { %v1131_v38 = vpop.permute.xlu1 %1130  ;;  %v1119_v27 = vadd.f32 %v1117_v59, %v1100_v43 }
 0x208   :  { %v1134_v6 = vsub.f32 %v1353_v26, %v1131_v38 }
 0x20a   :  { %v1136_v18 = vand.u32 2147483647, %v1134_v6 }
 0x20c   :  { %v1138_v19 = vadd.f32 %v1136_v18, %v1119_v27  ;;  %v1146_v7 = vpop.permute.xlu1 %1145 }
 0x20d   :  { %v1152_v50 = vsub.f32 %v1354_v12, %v1146_v7 }
 0x20e   :  { %v1157_v55 = vadd.f32 %v1155_v34, %v1138_v19 }
 0x20f   :  { %v1154_v11 = vand.u32 2147483647, %v1152_v50 }
 0x211   :  { %v1165_v14 = vpop.permute.xlu1 %1164  ;;  %v1156_v40 = vadd.f32 %v1154_v11, %v1137_v32 }
 0x212   :  { %v1171_v10 = vsub.f32 %v1355_v13, %v1165_v14 }
 0x214   :  { %v1173_v51 = vand.u32 2147483647, %v1171_v10 }
 0x215   :  { %v1169_v20 = vpop.permute.xlu1 %1168 }
 0x216   :  { %v1175_v41 = vadd.f32 %v1173_v51, %v1156_v40  ;;  %v1172_v2 = vsub.f32 %v1355_v13, %v1169_v20 }
 0x218   :  { %v1194_v52 = vadd.f32 %v1192_v25, %v1175_v41  ;;  %v1174_v60 = vand.u32 2147483647, %v1172_v2 }
 0x21a   :  { %v1188_v35 = vpop.permute.xlu1 %1187  ;;  %v1176_v22 = vadd.f32 %v1174_v60, %v1157_v55 }
 0x21b   :  { %v1191_v45 = vsub.f32 %v1356_v9, %v1188_v35 }
 0x21d   :  { %v1193_v56 = vand.u32 2147483647, %v1191_v45 }
 0x21f   :  { %v1195_v47 = vadd.f32 %v1193_v56, %v1176_v22  ;;  %v1203_v36 = vpop.permute.xlu1 %1202 }
 0x220   :  { %v1209_v4 = vsub.f32 %v1357_v23, %v1203_v36 }
 0x221   :  { %v1214_v0 = vadd.f32 %v1212_v44, %v1195_v47 }
 0x222   :  { %v1211_v39 = vand.u32 2147483647, %v1209_v4 }
 0x224   :  { %v1222_v8 = vpop.permute.xlu1 %1221  ;;  %v1213_v46 = vadd.f32 %v1211_v39, %v1194_v52 }
 0x225   :  { %v1228_v16 = vsub.f32 %v1358_v30, %v1222_v8 }
 0x227   :  { %v1230_v26 = vand.u32 2147483647, %v1228_v16 }
 0x228   :  { %v1226_v48 = vpop.permute.xlu1 %1225 }
 0x229   :  { %v1229_v5 = vsub.f32 %v1358_v30, %v1226_v48  ;;  %v1232_v37 = vadd.f32 %v1230_v26, %v1213_v46 }
 0x22b   :  { %v1231_v3 = vand.u32 2147483647, %v1229_v5  ;;  %v1251_v1 = vadd.f32 %v1249_v15, %v1232_v37 }
 0x22d   :  { %v1245_v43 = vpop.permute.xlu1 %1244  ;;  %v1233_v54 = vadd.f32 %v1231_v3, %v1214_v0 }
 0x22e   :  { %v1248_v61 = vsub.f32 %v1359_v62, %v1245_v43 }
 0x230   :  { %v1250_v57 = vand.u32 2147483647, %v1248_v61 }
 0x232   :  { %v1252_v24 = vadd.f32 %v1250_v57, %v1233_v54  ;;  %v1260_v33 = vpop.permute.xlu1 %1259 }
 0x233   :  { %v1266_v12 = vsub.f32 %v1360_v49, %v1260_v33 }
 0x234   :  { %v1271_v53 = vadd.f32 %v1269_v42, %v1252_v24 }
 0x235   :  { %v1268_v32 = vand.u32 2147483647, %v1266_v12 }
 0x236   :  { %1274 = vst [vmem:[#allocation7 + $0x18] sm:$0xff] %v1271_v53 }
 0x237   :  { %v1270_v17 = vadd.f32 %v1268_v32, %v1251_v1 }
 0x239   :  { %1273 = vst [vmem:[#allocation7 + $0x10] sm:$0xff] %v1270_v17 }
 0x23a   :  { %1548 = shalt.err (!%p1545_p6)
}
 0x23b   :  { %s1549_s10 = scalar_lea.hbm %s2172_s2, 512 }
 0x23c   :  { %p1550_p7 = scmp.ne.s32.totalorder %s2172_s2, %s1549_s10  ;;  %p1553_p8 = scmp.lt.u32.totalorder %s1549_s10, %s2172_s2 }
 0x23e   :  { %p1555_p9 = pnand %p1553_p8, %p1550_p7 }
 0x240   :  { %1558 = shalt.err (!%p1555_p9)
}
 0x241   :  { %1286 = dma.vmem_to_hbm [thread:$0]  %s1281_s6, 512, %s2172_s2, [#allocation4], %s1566_s19, %s1566_s19, %s1567_s20  }
 0x242   :  { %1563 = dma.done.wait [#allocation4], 512  }
 0x243   :  { %1564 = vsyncadd [#allocation4], 4294966784 }
 0x244   :  { %1290 = vsyncpa [#allocation3], 1 }
 0x245   :  { %1291 = vsyncpa [#allocation6], 1 }
 0x246   :  { %1292 = vsyncpa [#allocation4], 1 }

</bundles_post_ra>
